<compile_context>
chip_gen: v7x
topology: tpu7x:2x2x1
jax: 0.10.0
libtpu: 0.0.40
codegen_flags: <defaults>
</compile_context>

<pallas_src>
import functools
import math

import jax
import jax.numpy as jnp
from jax import lax
from jax.experimental import pallas as pl
from jax.experimental.pallas import tpu as pltpu

F32_MAX = float(jnp.finfo(jnp.float32).max)
NEG_BIG = -1e30                   # "minus infinity" that never yields inf-inf NaNs
VMEM_LIMIT = 32 * 1024 * 1024     # safe on v5e/v6e (128 MiB) and v7x (64 MiB)


def _tile(dim, target, quantum):
    """Largest multiple of `quantum` <= target that divides `dim`, else the full dim."""
    t = min(target, dim)
    t = (t // quantum) * quantum
    while t >= quantum:
        if dim % t == 0:
            return t
        t -= quantum
    if dim > 8 * max(target, quantum):
        raise ValueError(
            f"dim={dim} has no tile that is a multiple of {quantum}; "
            "pad the input or pick shapes divisible by the tile quantum.")
    return dim


# ---------------------------------------------------------------------------
# Tiled matmul + bias:  out = x @ w + b   (output projection)
# ---------------------------------------------------------------------------
def _matmul_bias_kernel(x_ref, w_ref, b_ref, o_ref, acc_ref):
    @pl.when(pl.program_id(2) == 0)
    def _():
        acc_ref[...] = jnp.zeros_like(acc_ref)

    acc_ref[...] += jnp.dot(x_ref[...], w_ref[...],
                            preferred_element_type=jnp.float32)

    @pl.when(pl.program_id(2) == pl.num_programs(2) - 1)
    def _():
        o_ref[...] = (acc_ref[...] + b_ref[...]).astype(o_ref.dtype)


def _linear(x2d, w, b, *, out_dtype):
    """x2d: (M, K), w: (K, N), b: (N,). Returns (M, N) in out_dtype."""
    M, K = x2d.shape
    _, N = w.shape
    tm = _tile(M, 512, 8)
    tk = _tile(K, 512, 128)
    tn = _tile(N, 512, 128)
    grid = (M // tm, N // tn, K // tk)
    return pl.pallas_call(
        _matmul_bias_kernel,
        out_shape=jax.ShapeDtypeStruct((M, N), out_dtype),
        grid=grid,
        in_specs=[
            pl.BlockSpec((tm, tk), lambda i, j, k: (i, k)),
            pl.BlockSpec((tk, tn), lambda i, j, k: (k, j)),
            pl.BlockSpec((1, tn), lambda i, j, k: (0, j)),
        ],
        out_specs=pl.BlockSpec((tm, tn), lambda i, j, k: (i, j)),
        scratch_shapes=[pltpu.VMEM((tm, tn), jnp.float32)],
        compiler_params=pltpu.CompilerParams(
            dimension_semantics=("parallel", "parallel", "arbitrary"),
            vmem_limit_bytes=VMEM_LIMIT),
    )(x2d, w, b.astype(jnp.float32).reshape(1, N))


# ---------------------------------------------------------------------------
# QKV projection: one kernel, three outputs (q, k, v), each (M, E) head-merged.
# Reads x once; no (M, 3E) intermediate, no split, no transposes downstream.
# ---------------------------------------------------------------------------
def _qkv_matmul_kernel(x_ref, wq_ref, wk_ref, wv_ref, bq_ref, bk_ref, bv_ref,
                       q_ref, k_ref, v_ref, accq, acck, accv):
    @pl.when(pl.program_id(2) == 0)
    def _():
        accq[...] = jnp.zeros_like(accq)
        acck[...] = jnp.zeros_like(acck)
        accv[...] = jnp.zeros_like(accv)

    x = x_ref[...]
    accq[...] += jnp.dot(x, wq_ref[...], preferred_element_type=jnp.float32)
    acck[...] += jnp.dot(x, wk_ref[...], preferred_element_type=jnp.float32)
    accv[...] += jnp.dot(x, wv_ref[...], preferred_element_type=jnp.float32)

    @pl.when(pl.program_id(2) == pl.num_programs(2) - 1)
    def _():
        q_ref[...] = (accq[...] + bq_ref[...]).astype(q_ref.dtype)
        k_ref[...] = (acck[...] + bk_ref[...]).astype(k_ref.dtype)
        v_ref[...] = (accv[...] + bv_ref[...]).astype(v_ref.dtype)


def _qkv_linear(x2d, wq, wk, wv, bq, bk, bv, *, out_dtype):
    M, K = x2d.shape
    N = wq.shape[1]
    tm = _tile(M, 512, 8)
    tk = _tile(K, 512, 128)
    tn = _tile(N, 512, 128)
    grid = (M // tm, N // tn, K // tk)

    x_spec = pl.BlockSpec((tm, tk), lambda i, j, k: (i, k))
    w_spec = pl.BlockSpec((tk, tn), lambda i, j, k: (k, j))
    b_spec = pl.BlockSpec((1, tn), lambda i, j, k: (0, j))
    o_spec = pl.BlockSpec((tm, tn), lambda i, j, k: (i, j))
    out_sds = jax.ShapeDtypeStruct((M, N), out_dtype)
    b32 = lambda b: b.astype(jnp.float32).reshape(1, N)

    return pl.pallas_call(
        _qkv_matmul_kernel,
        out_shape=(out_sds, out_sds, out_sds),
        grid=grid,
        in_specs=[x_spec, w_spec, w_spec, w_spec, b_spec, b_spec, b_spec],
        out_specs=(o_spec, o_spec, o_spec),
        scratch_shapes=[pltpu.VMEM((tm, tn), jnp.float32) for _ in range(3)],
        compiler_params=pltpu.CompilerParams(
            dimension_semantics=("parallel", "parallel", "arbitrary"),
            vmem_limit_bytes=VMEM_LIMIT),
    )(x2d, wq, wk, wv, b32(bq), b32(bk), b32(bv))


# ---------------------------------------------------------------------------
# Causal flash attention.  Grid = (B, S//tq, S//tk); all heads per grid step.
# q/k/v/out are (B, S, E) head-merged (lane-dense blocks, no transposes).
# ---------------------------------------------------------------------------
def _flash_attn_kernel(q_ref, k_ref, v_ref, o_ref, m_sc, l_sc, acc_sc,
                       *, tq, tk, num_heads, head_dim, approx_recip):
    i = pl.program_id(1)          # query-tile index
    j = pl.program_id(2)          # key/value-tile index (reduction axis)

    @pl.when(j == 0)
    def _init():
        m_sc[...] = jnp.full_like(m_sc, NEG_BIG)
        l_sc[...] = jnp.zeros_like(l_sc)
        acc_sc[...] = jnp.zeros_like(acc_sc)

    row0 = i * tq
    col0 = j * tk
    run_tile = col0 <= row0 + (tq - 1)        # tile not entirely above the diagonal
    needs_mask = col0 + (tk - 1) > row0       # tile crosses the diagonal

    def _process(masked):
        if masked:
            rows = row0 + lax.broadcasted_iota(jnp.int32, (tq, tk), 0)
            cols = col0 + lax.broadcasted_iota(jnp.int32, (tq, tk), 1)
            causal = rows >= cols             # shared across all heads
        for h in range(num_heads):            # static loop: unrolled at trace time
            d0 = h * head_dim
            cslice = slice(d0, d0 + head_dim)
            q_h = q_ref[0, :, cslice]                      # (tq, hd)
            k_h = k_ref[0, :, cslice]                      # (tk, hd)
            # Scores: contract head dims directly (no explicit K transpose).
            s = lax.dot_general(q_h, k_h, (((1,), (1,)), ((), ())),
                                preferred_element_type=jnp.float32)   # (tq, tk)
            if masked:
                s = jnp.where(causal, s, NEG_BIG)
            m_prev = m_sc[:, h:h + 1]
            m_new = jnp.maximum(m_prev, jnp.max(s, axis=-1, keepdims=True))
            alpha = jnp.exp(m_prev - m_new)
            p = jnp.exp(s - m_new)
            l_sc[:, h:h + 1] = alpha * l_sc[:, h:h + 1] + jnp.sum(
                p, axis=-1, keepdims=True)
            acc_sc[:, cslice] = alpha * acc_sc[:, cslice] + jnp.dot(
                p.astype(v_ref.dtype), v_ref[0, :, cslice],
                preferred_element_type=jnp.float32)
            m_sc[:, h:h + 1] = m_new

    # Tiles fully below the diagonal skip the iota/compare/select mask work;
    # tiles fully above it skip everything (and are never DMA'd -- see kv index_map).
    @pl.when(jnp.logical_and(run_tile, jnp.logical_not(needs_mask)))
    def _unmasked():
        _process(masked=False)

    @pl.when(jnp.logical_and(run_tile, needs_mask))
    def _masked():
        _process(masked=True)

    @pl.when(j == pl.num_programs(2) - 1)
    def _finalize():
        for h in range(num_heads):
            d0 = h * head_dim
            cslice = slice(d0, d0 + head_dim)
            l_h = l_sc[:, h:h + 1]
            if approx_recip:
                acc_sc[:, cslice] = acc_sc[:, cslice] * pl.reciprocal(l_h, approx=True)
            else:
                acc_sc[:, cslice] = acc_sc[:, cslice] / l_h
        # Single lane-dense (tq, E) store (head-merged layout).
        o_ref[0] = acc_sc[...].astype(o_ref.dtype)


def _flash_attention(q, k, v, *, num_heads, approx_recip,
                     q_block=None, kv_block=None):
    """q, k, v: (B, S, E) head-merged. Returns (B, S, E) in q.dtype."""
    B, S, E = q.shape
    head_dim = E // num_heads
    tq = q_block if q_block is not None else _tile(S, 256, 8)
    tk = kv_block if kv_block is not None else _tile(S, 512, 8)
    assert S % tq == 0 and S % tk == 0, (S, tq, tk)

    def q_index(b, i, j):
        return (b, i, 0)

    def kv_index(b, i, j):
        # Clamp at the causal boundary: once j passes the last KV tile containing any
        # (row >= col) entry for this q tile, keep returning that block so Pallas
        # never DMAs the (skipped) upper-triangle tiles.  ki=0 is always executed
        # first, so every query row sees at least one unmasked column.
        j_last = ((i + 1) * tq - 1) // tk
        return (b, jnp.minimum(j, j_last), 0)

    kernel = functools.partial(
        _flash_attn_kernel, tq=tq, tk=tk, num_heads=num_heads,
        head_dim=head_dim, approx_recip=approx_recip)

    return pl.pallas_call(
        kernel,
        out_shape=jax.ShapeDtypeStruct((B, S, E), q.dtype),
        grid=(B, S // tq, S // tk),
        in_specs=[
            pl.BlockSpec((1, tq, E), q_index),
            pl.BlockSpec((1, tk, E), kv_index),
            pl.BlockSpec((1, tk, E), kv_index),
        ],
        out_specs=pl.BlockSpec((1, tq, E), q_index),
        scratch_shapes=[
            pltpu.VMEM((tq, num_heads), jnp.float32),   # running max  m (per head)
            pltpu.VMEM((tq, num_heads), jnp.float32),   # running sum  l (per head)
            pltpu.VMEM((tq, E), jnp.float32),           # running attention accumulator
        ],
        compiler_params=pltpu.CompilerParams(
            dimension_semantics=("parallel", "parallel", "arbitrary"),
            vmem_limit_bytes=VMEM_LIMIT),
    )(q, k, v)


# ---------------------------------------------------------------------------
# Full module forward
# ---------------------------------------------------------------------------
def gpt2_attention(x, wqkv, bqkv, wproj, bproj, *, num_heads, scale=False,
                   compute_dtype=jnp.bfloat16, approx_recip=False,
                   q_block=None, kv_block=None):
    """x: (B, S, E). wqkv: (E, 3E), wproj: (E, E) stored as (in, out).

    Returns attended features (B, S, E) in x.dtype.
    """
    B, S, E = x.shape
    assert E % num_heads == 0
    head_dim = E // num_heads

    # Per-role weight slices (tiny one-time op).  Folding 1/sqrt(head_dim) into the
    # query projection (in f32, before any bf16 cast) hoists the scale out of the
    # attention KV loop entirely.
    wq, wk, wv = wqkv[:, :E], wqkv[:, E:2 * E], wqkv[:, 2 * E:]
    bq, bk, bv = bqkv[:E], bqkv[E:2 * E], bqkv[2 * E:]
    if scale:
        c = 1.0 / math.sqrt(head_dim)
        wq = wq * c
        bq = bq * c

    cd = compute_dtype
    x2d = x.reshape(B * S, E).astype(cd)

    # 1) QKV projection -> q, k, v in head-merged (B*S, E) layout.
    q2, k2, v2 = _qkv_linear(x2d, wq.astype(cd), wk.astype(cd), wv.astype(cd),
                             bq, bk, bv, out_dtype=cd)

    # 2) Causal flash attention (all heads per grid step), output head-merged.
    a = _flash_attention(q2.reshape(B, S, E), k2.reshape(B, S, E),
                         v2.reshape(B, S, E), num_heads=num_heads,
                         approx_recip=approx_recip,
                         q_block=q_block, kv_block=kv_block)

    # 3) Output projection (free reshape, no head-merge transpose needed).
    out = _linear(a.reshape(B * S, E), wproj.astype(cd), bproj, out_dtype=x.dtype)
    return out.reshape(B, S, E)


# ---------------------------------------------------------------------------
# Pure-JAX reference of the PyTorch module forward (eval mode)
# ---------------------------------------------------------------------------
def reference_attention(x, wqkv, bqkv, wproj, bproj, num_heads, scale):
    B, S, E = x.shape
    hd = E // num_heads
    qkv = x @ wqkv + bqkv                                    # (B, S, 3E)
    q, k, v = jnp.split(qkv, 3, axis=-1)

    def split_heads(t):
        return t.reshape(B, S, num_heads, hd).transpose(0, 2, 1, 3)

    q, k, v = split_heads(q), split_heads(k), split_heads(v)
    w = jnp.einsum("bhqd,bhkd->bhqk", q, k)
    if scale:
        w = w * (1.0 / math.sqrt(hd))
    mask = jnp.tril(jnp.ones((S, S), jnp.float32))
    logits = w * mask - F32_MAX * (1.0 - mask)
    p = jax.nn.softmax(logits, axis=-1)
    a = jnp.einsum("bhqk,bhkd->bhqd", p, v)
    a = a.transpose(0, 2, 1, 3).reshape(B, S, E)
    return a @ wproj + bproj


if __name__ == "__main__":
    B, S, E, H = 2, 128, 64, 8   # batch, seq, embed_dim, num_heads (head_dim = 8)
    key = jax.random.PRNGKey(0)
    k1, k2, k3, k4, k5 = jax.random.split(key, 5)
    x = jax.random.normal(k1, (B, S, E), jnp.float32)
    wqkv = 0.02 * jax.random.normal(k2, (E, 3 * E), jnp.float32)
    bqkv = 0.01 * jax.random.normal(k3, (3 * E,), jnp.float32)
    wproj = 0.02 * jax.random.normal(k4, (E, E), jnp.float32)
    bproj = 0.01 * jax.random.normal(k5, (E,), jnp.float32)

    # f32 MXU path with small q/kv blocks so the causal DMA clamp, compute skip and
    # masked/unmasked tile paths are all exercised (flash grid = (2, 4, 2)).
    ref = reference_attention(x, wqkv, bqkv, wproj, bproj, H, False)
    out_f32 = gpt2_attention(x, wqkv, bqkv, wproj, bproj, num_heads=H, scale=False,
                             compute_dtype=jnp.float32, q_block=32, kv_block=64)
    out_f32 = jax.block_until_ready(out_f32)
    err = float(jnp.max(jnp.abs(out_f32 - ref)))
    assert jnp.allclose(out_f32, ref, atol=2e-4, rtol=2e-4), f"f32 max abs err = {err}"

    # scale=True path: validates the 1/sqrt(head_dim) fold into W_q / b_q.
    ref_s = reference_attention(x, wqkv, bqkv, wproj, bproj, H, True)
    out_s = gpt2_attention(x, wqkv, bqkv, wproj, bproj, num_heads=H, scale=True,
                           compute_dtype=jnp.float32, q_block=32, kv_block=64)
    out_s = jax.block_until_ready(out_s)
    err_s = float(jnp.max(jnp.abs(out_s - ref_s)))
    assert jnp.allclose(out_s, ref_s, atol=2e-4, rtol=2e-4), f"scaled max abs err = {err_s}"

    # Production-style setting: bf16 MXU operands, f32 accumulation/softmax,
    # EUP approximate reciprocal in the softmax epilogue, default (large) tiles.
    out_bf16 = gpt2_attention(x, wqkv, bqkv, wproj, bproj, num_heads=H, scale=False,
                              compute_dtype=jnp.bfloat16, approx_recip=True)
    out_bf16 = jax.block_until_ready(out_bf16)
    err_b = float(jnp.max(jnp.abs(out_bf16 - ref)))
    assert jnp.allclose(out_bf16, ref, atol=3e-2, rtol=3e-2), f"bf16 max abs err = {err_b}"

    print("KERNEL_OK")
</pallas_src>

<mosaic_0001>
module attributes {stable_mosaic.version = 11 : i64} {
  func.func @_qkv_matmul_kernel(%arg0: i32, %arg1: i32, %arg2: i32, %arg3: memref<256x64xf32, #tpu.memory_space<vmem>>, %arg4: memref<64x64xf32, #tpu.memory_space<vmem>>, %arg5: memref<64x64xf32, #tpu.memory_space<vmem>>, %arg6: memref<64x64xf32, #tpu.memory_space<vmem>>, %arg7: memref<1x64xf32, #tpu.memory_space<vmem>>, %arg8: memref<1x64xf32, #tpu.memory_space<vmem>>, %arg9: memref<1x64xf32, #tpu.memory_space<vmem>>, %arg10: memref<256x64xf32, #tpu.memory_space<vmem>>, %arg11: memref<256x64xf32, #tpu.memory_space<vmem>>, %arg12: memref<256x64xf32, #tpu.memory_space<vmem>>, %arg13: memref<256x64xf32, #tpu.memory_space<vmem>>, %arg14: memref<256x64xf32, #tpu.memory_space<vmem>>, %arg15: memref<256x64xf32, #tpu.memory_space<vmem>>) attributes {dimension_semantics = [#tpu.dimension_semantics<parallel>, #tpu.dimension_semantics<parallel>, #tpu.dimension_semantics<arbitrary>], iteration_bounds = array<i64: 1, 1, 1>, scalar_prefetch = 0 : i64, scratch_operands = 3 : i64, tpu.core_type = #tpu.core_type<tc>, window_params = [{transform_indices = @transform_0, window_bounds = array<i64: 256, 64>}, {transform_indices = @transform_1, window_bounds = array<i64: 64, 64>}, {transform_indices = @transform_2, window_bounds = array<i64: 64, 64>}, {transform_indices = @transform_3, window_bounds = array<i64: 64, 64>}, {transform_indices = @transform_4, window_bounds = array<i64: 1, 64>}, {transform_indices = @transform_5, window_bounds = array<i64: 1, 64>}, {transform_indices = @transform_6, window_bounds = array<i64: 1, 64>}, {transform_indices = @transform_7, window_bounds = array<i64: 256, 64>}, {transform_indices = @transform_8, window_bounds = array<i64: 256, 64>}, {transform_indices = @transform_9, window_bounds = array<i64: 256, 64>}]} {
    %c0_i32 = arith.constant 0 : i32
    %0 = arith.cmpi eq, %arg2, %c0_i32 : i32
    %1 = arith.extui %0 : i1 to i32
    %c0_i32_0 = arith.constant 0 : i32
    %2 = arith.cmpi ne, %1, %c0_i32_0 : i32
    scf.if %2 {
      %cst_24 = arith.constant 0.000000e+00 : f32
      %22 = vector.broadcast %cst_24 : f32 to vector<256x64xf32>
      %c0_25 = arith.constant 0 : index
      %c0_26 = arith.constant 0 : index
      %23 = vector.load %arg13[%c0_25, %c0_26] : memref<256x64xf32, #tpu.memory_space<vmem>>, vector<256x64xf32>
      tpu.vector_store %arg13[%c0_25, %c0_26], %22 {strides = array<i32>} : memref<256x64xf32, #tpu.memory_space<vmem>>, vector<256x64xf32>,
      %cst_27 = arith.constant 0.000000e+00 : f32
      %24 = vector.broadcast %cst_27 : f32 to vector<256x64xf32>
      %c0_28 = arith.constant 0 : index
      %c0_29 = arith.constant 0 : index
      %25 = vector.load %arg14[%c0_28, %c0_29] : memref<256x64xf32, #tpu.memory_space<vmem>>, vector<256x64xf32>
      tpu.vector_store %arg14[%c0_28, %c0_29], %24 {strides = array<i32>} : memref<256x64xf32, #tpu.memory_space<vmem>>, vector<256x64xf32>,
      %cst_30 = arith.constant 0.000000e+00 : f32
      %26 = vector.broadcast %cst_30 : f32 to vector<256x64xf32>
      %c0_31 = arith.constant 0 : index
      %c0_32 = arith.constant 0 : index
      %27 = vector.load %arg15[%c0_31, %c0_32] : memref<256x64xf32, #tpu.memory_space<vmem>>, vector<256x64xf32>
      tpu.vector_store %arg15[%c0_31, %c0_32], %26 {strides = array<i32>} : memref<256x64xf32, #tpu.memory_space<vmem>>, vector<256x64xf32>,
    } else {
    }
    %c0 = arith.constant 0 : index
    %c0_1 = arith.constant 0 : index
    %3 = vector.load %arg3[%c0, %c0_1] : memref<256x64xf32, #tpu.memory_space<vmem>>, vector<256x64xf32>
    %c0_2 = arith.constant 0 : index
    %c0_3 = arith.constant 0 : index
    %4 = vector.load %arg13[%c0_2, %c0_3] : memref<256x64xf32, #tpu.memory_space<vmem>>, vector<256x64xf32>
    %c0_4 = arith.constant 0 : index
    %c0_5 = arith.constant 0 : index
    %5 = vector.load %arg4[%c0_4, %c0_5] : memref<64x64xf32, #tpu.memory_space<vmem>>, vector<64x64xf32>
    %cst = arith.constant dense<0.000000e+00> : vector<256x64xf32>
    %6 = tpu.matmul %3, %5, %cst {dimension_numbers = #tpu.dot_dimension_numbers<[1], [0], [0], [1], [0, 0, 1, 1], [], []>} : vector<256x64xf32>, vector<64x64xf32>, vector<256x64xf32> -> vector<256x64xf32>
    %7 = arith.addf %4, %6 : vector<256x64xf32>
    %c0_6 = arith.constant 0 : index
    %c0_7 = arith.constant 0 : index
    %8 = vector.load %arg13[%c0_6, %c0_7] : memref<256x64xf32, #tpu.memory_space<vmem>>, vector<256x64xf32>
    tpu.vector_store %arg13[%c0_6, %c0_7], %7 {strides = array<i32>} : memref<256x64xf32, #tpu.memory_space<vmem>>, vector<256x64xf32>,
    %c0_8 = arith.constant 0 : index
    %c0_9 = arith.constant 0 : index
    %9 = vector.load %arg14[%c0_8, %c0_9] : memref<256x64xf32, #tpu.memory_space<vmem>>, vector<256x64xf32>
    %c0_10 = arith.constant 0 : index
    %c0_11 = arith.constant 0 : index
    %10 = vector.load %arg5[%c0_10, %c0_11] : memref<64x64xf32, #tpu.memory_space<vmem>>, vector<64x64xf32>
    %cst_12 = arith.constant dense<0.000000e+00> : vector<256x64xf32>
    %11 = tpu.matmul %3, %10, %cst_12 {dimension_numbers = #tpu.dot_dimension_numbers<[1], [0], [0], [1], [0, 0, 1, 1], [], []>} : vector<256x64xf32>, vector<64x64xf32>, vector<256x64xf32> -> vector<256x64xf32>
    %12 = arith.addf %9, %11 : vector<256x64xf32>
    %c0_13 = arith.constant 0 : index
    %c0_14 = arith.constant 0 : index
    %13 = vector.load %arg14[%c0_13, %c0_14] : memref<256x64xf32, #tpu.memory_space<vmem>>, vector<256x64xf32>
    tpu.vector_store %arg14[%c0_13, %c0_14], %12 {strides = array<i32>} : memref<256x64xf32, #tpu.memory_space<vmem>>, vector<256x64xf32>,
    %c0_15 = arith.constant 0 : index
    %c0_16 = arith.constant 0 : index
    %14 = vector.load %arg15[%c0_15, %c0_16] : memref<256x64xf32, #tpu.memory_space<vmem>>, vector<256x64xf32>
    %c0_17 = arith.constant 0 : index
    %c0_18 = arith.constant 0 : index
    %15 = vector.load %arg6[%c0_17, %c0_18] : memref<64x64xf32, #tpu.memory_space<vmem>>, vector<64x64xf32>
    %cst_19 = arith.constant dense<0.000000e+00> : vector<256x64xf32>
    %16 = tpu.matmul %3, %15, %cst_19 {dimension_numbers = #tpu.dot_dimension_numbers<[1], [0], [0], [1], [0, 0, 1, 1], [], []>} : vector<256x64xf32>, vector<64x64xf32>, vector<256x64xf32> -> vector<256x64xf32>
    %17 = arith.addf %14, %16 : vector<256x64xf32>
    %c0_20 = arith.constant 0 : index
    %c0_21 = arith.constant 0 : index
    %18 = vector.load %arg15[%c0_20, %c0_21] : memref<256x64xf32, #tpu.memory_space<vmem>>, vector<256x64xf32>
    tpu.vector_store %arg15[%c0_20, %c0_21], %17 {strides = array<i32>} : memref<256x64xf32, #tpu.memory_space<vmem>>, vector<256x64xf32>,
    %c0_i32_22 = arith.constant 0 : i32
    %19 = arith.cmpi eq, %arg2, %c0_i32_22 : i32
    %20 = arith.extui %19 : i1 to i32
    %c0_i32_23 = arith.constant 0 : i32
    %21 = arith.cmpi ne, %20, %c0_i32_23 : i32
    scf.if %21 {
      %c0_24 = arith.constant 0 : index
      %c0_25 = arith.constant 0 : index
      %22 = vector.load %arg13[%c0_24, %c0_25] : memref<256x64xf32, #tpu.memory_space<vmem>>, vector<256x64xf32>
      %c0_26 = arith.constant 0 : index
      %c0_27 = arith.constant 0 : index
      %23 = vector.load %arg7[%c0_26, %c0_27] : memref<1x64xf32, #tpu.memory_space<vmem>>, vector<1x64xf32>
      %24 = vector.broadcast %23 : vector<1x64xf32> to vector<256x64xf32>
      %25 = arith.addf %22, %24 : vector<256x64xf32>
      %c0_28 = arith.constant 0 : index
      %c0_29 = arith.constant 0 : index
      %26 = vector.load %arg10[%c0_28, %c0_29] : memref<256x64xf32, #tpu.memory_space<vmem>>, vector<256x64xf32>
      tpu.vector_store %arg10[%c0_28, %c0_29], %25 {strides = array<i32>} : memref<256x64xf32, #tpu.memory_space<vmem>>, vector<256x64xf32>,
      %c0_30 = arith.constant 0 : index
      %c0_31 = arith.constant 0 : index
      %27 = vector.load %arg14[%c0_30, %c0_31] : memref<256x64xf32, #tpu.memory_space<vmem>>, vector<256x64xf32>
      %c0_32 = arith.constant 0 : index
      %c0_33 = arith.constant 0 : index
      %28 = vector.load %arg8[%c0_32, %c0_33] : memref<1x64xf32, #tpu.memory_space<vmem>>, vector<1x64xf32>
      %29 = vector.broadcast %28 : vector<1x64xf32> to vector<256x64xf32>
      %30 = arith.addf %27, %29 : vector<256x64xf32>
      %c0_34 = arith.constant 0 : index
      %c0_35 = arith.constant 0 : index
      %31 = vector.load %arg11[%c0_34, %c0_35] : memref<256x64xf32, #tpu.memory_space<vmem>>, vector<256x64xf32>
      tpu.vector_store %arg11[%c0_34, %c0_35], %30 {strides = array<i32>} : memref<256x64xf32, #tpu.memory_space<vmem>>, vector<256x64xf32>,
      %c0_36 = arith.constant 0 : index
      %c0_37 = arith.constant 0 : index
      %32 = vector.load %arg15[%c0_36, %c0_37] : memref<256x64xf32, #tpu.memory_space<vmem>>, vector<256x64xf32>
      %c0_38 = arith.constant 0 : index
      %c0_39 = arith.constant 0 : index
      %33 = vector.load %arg9[%c0_38, %c0_39] : memref<1x64xf32, #tpu.memory_space<vmem>>, vector<1x64xf32>
      %34 = vector.broadcast %33 : vector<1x64xf32> to vector<256x64xf32>
      %35 = arith.addf %32, %34 : vector<256x64xf32>
      %c0_40 = arith.constant 0 : index
      %c0_41 = arith.constant 0 : index
      %36 = vector.load %arg12[%c0_40, %c0_41] : memref<256x64xf32, #tpu.memory_space<vmem>>, vector<256x64xf32>
      tpu.vector_store %arg12[%c0_40, %c0_41], %35 {strides = array<i32>} : memref<256x64xf32, #tpu.memory_space<vmem>>, vector<256x64xf32>,
    } else {
    }
    return
  }
  func.func @transform_0(%arg0: i32, %arg1: i32, %arg2: i32) -> (i32, i32) {
    %c0_i32 = arith.constant 0 : i32
    return %arg0, %arg2 : i32, i32
  }
  func.func @transform_1(%arg0: i32, %arg1: i32, %arg2: i32) -> (i32, i32) {
    %c0_i32 = arith.constant 0 : i32
    return %arg2, %arg1 : i32, i32
  }
  func.func @transform_2(%arg0: i32, %arg1: i32, %arg2: i32) -> (i32, i32) {
    %c0_i32 = arith.constant 0 : i32
    return %arg2, %arg1 : i32, i32
  }
  func.func @transform_3(%arg0: i32, %arg1: i32, %arg2: i32) -> (i32, i32) {
    %c0_i32 = arith.constant 0 : i32
    return %arg2, %arg1 : i32, i32
  }
  func.func @transform_4(%arg0: i32, %arg1: i32, %arg2: i32) -> (i32, i32) {
    %c0_i32 = arith.constant 0 : i32
    %c0_i32_0 = arith.constant 0 : i32
    return %c0_i32, %arg1 : i32, i32
  }
  func.func @transform_5(%arg0: i32, %arg1: i32, %arg2: i32) -> (i32, i32) {
    %c0_i32 = arith.constant 0 : i32
    %c0_i32_0 = arith.constant 0 : i32
    return %c0_i32, %arg1 : i32, i32
  }
  func.func @transform_6(%arg0: i32, %arg1: i32, %arg2: i32) -> (i32, i32) {
    %c0_i32 = arith.constant 0 : i32
    %c0_i32_0 = arith.constant 0 : i32
    return %c0_i32, %arg1 : i32, i32
  }
  func.func @transform_7(%arg0: i32, %arg1: i32, %arg2: i32) -> (i32, i32) {
    %c0_i32 = arith.constant 0 : i32
    return %arg0, %arg1 : i32, i32
  }
  func.func @transform_8(%arg0: i32, %arg1: i32, %arg2: i32) -> (i32, i32) {
    %c0_i32 = arith.constant 0 : i32
    return %arg0, %arg1 : i32, i32
  }
  func.func @transform_9(%arg0: i32, %arg1: i32, %arg2: i32) -> (i32, i32) {
    %c0_i32 = arith.constant 0 : i32
    return %arg0, %arg1 : i32, i32
  }
}

</mosaic_0001>

<bundles_post_ra>
// kernel: tpu_custom_call.1
= control target key start
LH: loop header
LB: loop body
LE: loop exit
PB: predicated region body
PF: predicated region fallthrough
CT: control target
= control target key end

     0   :  { %vm33_vm0 = vcmask 523264   ;;  %v2038_v3 = vmov 0.0   ;;  %s3260_s1 = inlined_call_operand.vmem [shape: f32[64,64], index: 1, kind: input, shape index: {}]   ;;  %s3261_s0 = inlined_call_operand.vmem [shape: f32[256,64], index: 0, kind: input, shape index: {}]   ;;  %s3262_s2 = inlined_call_operand.vmem [shape: f32[64,64], index: 2, kind: input, shape index: {}]   ;;  %s3263_s3 = inlined_call_operand.vmem [shape: f32[64,64], index: 3, kind: input, shape index: {}]   ;;  %s3264_s4 = inlined_call_operand.vmem [shape: f32[1,64], index: 4, kind: input, shape index: {}]   ;;  %s3265_s7 = inlined_call_operand.vmem [shape: f32[256,64], index: 7, kind: output, shape index: {0}]   ;;  %s3266_s5 = inlined_call_operand.vmem [shape: f32[1,64], index: 5, kind: input, shape index: {}]   ;;  %s3267_s6 = inlined_call_operand.vmem [shape: f32[1,64], index: 6, kind: input, shape index: {}]   ;;  %s3268_s8 = inlined_call_operand.vmem [shape: f32[256,64], index: 8, kind: output, shape index: {1}]   ;;  %s3269_s9 = inlined_call_operand.vmem [shape: f32[256,64], index: 9, kind: output, shape index: {2}]  }
   0x1   :  { %v2092_v0 = vld [vmem:[%s3260_s1] sm:$0xff]  ;;  %v2097_v1 = vld [vmem:[%s3260_s1 + $0x8] sm:$0xff]  ;;  %v2102_v2 = vld [vmem:[%s3260_s1 + $0x10] sm:$0xff]  ;;  %35 = vst.msk [vmem:[#allocation2 + $0x8] sm:$0xff] %vm33_vm0, %v2038_v3 }
   0x2   :  { %34 = vst.msk [vmem:[#allocation2] sm:$0xff] %vm33_vm0, %v2038_v3  ;;  %36 = vst.msk [vmem:[#allocation2 + $0x10] sm:$0xff] %vm33_vm0, %v2038_v3  ;;  %v1981_v4 = vpack.c.bf16 %v2097_v1, %v2092_v0  ;;  %v197_v5 = vld [vmem:[%s3260_s1 + $0x18] sm:$0xff]  ;;  %v198_v7 = vld [vmem:[%s3260_s1 + $0x20] sm:$0xff] }
   0x3   :  { %37 = vst.msk [vmem:[#allocation2 + $0x18] sm:$0xff] %vm33_vm0, %v2038_v3  ;;  %38 = vst.msk [vmem:[#allocation2 + $0x20] sm:$0xff] %vm33_vm0, %v2038_v3  ;;  %v1985_v6 = vpack.c.bf16 %v197_v5, %v2102_v2  ;;  %v199_v8 = vld [vmem:[%s3260_s1 + $0x28] sm:$0xff]  ;;  %v2311_v9 = vld [vmem:[%s3261_s0] sm:$0xff] }
   0x4   :  { %39 = vst.msk [vmem:[#allocation2 + $0x28] sm:$0xff] %vm33_vm0, %v2038_v3  ;;  %40 = vst.msk [vmem:[#allocation2 + $0x30] sm:$0xff] %vm33_vm0, %v2038_v3  ;;  %1982 = vmatprep.subr.bf16.mxu0 %v1981_v4  ;;  %2029 = vmatprep.subr.bf16.mxu1 %v1981_v4  ;;  %v2316_v10 = vld [vmem:[%s3261_s0 + $0x80] sm:$0xff]  ;;  %v1989_v11 = vpack.c.bf16 %v199_v8, %v198_v7  ;;  %v200_v12 = vld [vmem:[%s3260_s1 + $0x30] sm:$0xff] }
   0x5   :  { %41 = vst.msk [vmem:[#allocation2 + $0x38] sm:$0xff] %vm33_vm0, %v2038_v3  ;;  %42 = vst.msk [vmem:[#allocation2 + $0x40] sm:$0xff] %vm33_vm0, %v2038_v3  ;;  %1984 = vmatpush3.bf16.msra.mxu0 %v1981_v4  ;;  %2033 = vmatpush3.bf16.msra.mxu1 %v1981_v4  ;;  %v201_v13 = vld [vmem:[%s3260_s1 + $0x38] sm:$0xff]  ;;  %v620_v15 = vld [vmem:[%s3262_s2] sm:$0xff] }
   0x6   :  { %43 = vst.msk [vmem:[#allocation2 + $0x48] sm:$0xff] %vm33_vm0, %v2038_v3  ;;  %44 = vst.msk [vmem:[#allocation2 + $0x50] sm:$0xff] %vm33_vm0, %v2038_v3  ;;  %1986 = vmatprep.subr.bf16.mxu0 %v1985_v6  ;;  %2030 = vmatprep.subr.bf16.mxu1 %v1985_v6  ;;  %v1993_v14 = vpack.c.bf16 %v201_v13, %v200_v12  ;;  %v621_v16 = vld [vmem:[%s3262_s2 + $0x8] sm:$0xff]  ;;  %v949_v17 = vld [vmem:[%s3263_s3] sm:$0xff] }
   0x7   :  { %45 = vst.msk [vmem:[#allocation2 + $0x58] sm:$0xff] %vm33_vm0, %v2038_v3  ;;  %46 = vst.msk [vmem:[#allocation2 + $0x60] sm:$0xff] %vm33_vm0, %v2038_v3  ;;  %1805 = vmatprep.mubr.msk.f32.mxu0 %vm33_vm0, %v2311_v9  ;;  %1829 = vmatprep.mubr.msk.f32.mxu1 %vm33_vm0, %v2316_v10  ;;  %v950_v18 = vld [vmem:[%s3263_s3 + $0x8] sm:$0xff]  ;;  %v1997_v19 = vpack.c.bf16 %v621_v16, %v620_v15  ;;  %v622_v21 = vld [vmem:[%s3262_s2 + $0x10] sm:$0xff] }
   0x8   :  { %47 = vst.msk [vmem:[#allocation2 + $0x68] sm:$0xff] %vm33_vm0, %v2038_v3  ;;  %48 = vst.msk [vmem:[#allocation2 + $0x70] sm:$0xff] %vm33_vm0, %v2038_v3  ;;  %v2013_v20 = vpack.c.bf16 %v950_v18, %v949_v17  ;;  %v623_v22 = vld [vmem:[%s3262_s2 + $0x18] sm:$0xff]  ;;  %v951_v23 = vld [vmem:[%s3263_s3 + $0x10] sm:$0xff] }
   0x9   :  { %49 = vst.msk [vmem:[#allocation2 + $0x78] sm:$0xff] %vm33_vm0, %v2038_v3  ;;  %50 = vst.msk [vmem:[#allocation2 + $0x80] sm:$0xff] %vm33_vm0, %v2038_v3  ;;  %1988 = vmatpush3.bf16.msra.mxu0 %v1985_v6  ;;  %2034 = vmatpush3.bf16.msra.mxu1 %v1985_v6  ;;  %v952_v24 = vld [vmem:[%s3263_s3 + $0x18] sm:$0xff]  ;;  %v2355_v25 = vld [vmem:[%s3261_s0 + $0x8] sm:$0xff]  ;;  %v2001_v29 = vpack.c.bf16 %v623_v22, %v622_v21 }
   0xa   :  { %51 = vst.msk [vmem:[#allocation2 + $0x88] sm:$0xff] %vm33_vm0, %v2038_v3  ;;  %52 = vst.msk [vmem:[#allocation2 + $0x90] sm:$0xff] %vm33_vm0, %v2038_v3  ;;  %1990 = vmatprep.subr.bf16.mxu0 %v1989_v11  ;;  %2031 = vmatprep.subr.bf16.mxu1 %v1989_v11  ;;  %v2360_v26 = vld [vmem:[%s3261_s0 + $0x88] sm:$0xff]  ;;  %v2365_v27 = vld [vmem:[%s3261_s0 + $0x10] sm:$0xff]  ;;  %v2017_v30 = vpack.c.bf16 %v952_v24, %v951_v23 }
   0xb   :  { %53 = vst.msk [vmem:[#allocation2 + $0x98] sm:$0xff] %vm33_vm0, %v2038_v3  ;;  %54 = vst.msk [vmem:[#allocation2 + $0xa0] sm:$0xff] %vm33_vm0, %v2038_v3  ;;  %v2370_v28 = vld [vmem:[%s3261_s0 + $0x90] sm:$0xff]  ;;  %v624_v31 = vld [vmem:[%s3262_s2 + $0x20] sm:$0xff] }
   0xc   :  { %55 = vst.msk [vmem:[#allocation2 + $0xa8] sm:$0xff] %vm33_vm0, %v2038_v3  ;;  %56 = vst.msk [vmem:[#allocation2 + $0xb0] sm:$0xff] %vm33_vm0, %v2038_v3  ;;  %v625_v32 = vld [vmem:[%s3262_s2 + $0x28] sm:$0xff]  ;;  %v953_v33 = vld [vmem:[%s3263_s3 + $0x20] sm:$0xff] }
   0xd   :  { %57 = vst.msk [vmem:[#allocation2 + $0xb8] sm:$0xff] %vm33_vm0, %v2038_v3  ;;  %58 = vst.msk [vmem:[#allocation2 + $0xc0] sm:$0xff] %vm33_vm0, %v2038_v3  ;;  %1992 = vmatpush3.bf16.msra.mxu0 %v1989_v11  ;;  %2035 = vmatpush3.bf16.msra.mxu1 %v1989_v11  ;;  %v954_v34 = vld [vmem:[%s3263_s3 + $0x28] sm:$0xff]  ;;  %v2391_v35 = vld [vmem:[%s3261_s0 + $0x18] sm:$0xff]  ;;  %v2005_v39 = vpack.c.bf16 %v625_v32, %v624_v31 }
   0xe   :  { %59 = vst.msk [vmem:[#allocation2 + $0xc8] sm:$0xff] %vm33_vm0, %v2038_v3  ;;  %60 = vst.msk [vmem:[#allocation2 + $0xd0] sm:$0xff] %vm33_vm0, %v2038_v3  ;;  %1994 = vmatprep.subr.bf16.mxu0 %v1993_v14  ;;  %2032 = vmatprep.subr.bf16.mxu1 %v1993_v14  ;;  %v2396_v36 = vld [vmem:[%s3261_s0 + $0x98] sm:$0xff]  ;;  %v2405_v37 = vld [vmem:[%s3261_s0 + $0x20] sm:$0xff]  ;;  %v2021_v40 = vpack.c.bf16 %v954_v34, %v953_v33 }
   0xf   :  { %61 = vst.msk [vmem:[#allocation2 + $0xd8] sm:$0xff] %vm33_vm0, %v2038_v3  ;;  %62 = vst.msk [vmem:[#allocation2 + $0xe0] sm:$0xff] %vm33_vm0, %v2038_v3  ;;  %v2410_v38 = vld [vmem:[%s3261_s0 + $0xa0] sm:$0xff]  ;;  %v626_v41 = vld [vmem:[%s3262_s2 + $0x30] sm:$0xff] }
  0x10   :  { %63 = vst.msk [vmem:[#allocation2 + $0xe8] sm:$0xff] %vm33_vm0, %v2038_v3  ;;  %64 = vst.msk [vmem:[#allocation2 + $0xf0] sm:$0xff] %vm33_vm0, %v2038_v3  ;;  %v627_v42 = vld [vmem:[%s3262_s2 + $0x38] sm:$0xff]  ;;  %v955_v43 = vld [vmem:[%s3263_s3 + $0x30] sm:$0xff] }
  0x11   :  { %65 = vst.msk [vmem:[#allocation2 + $0xf8] sm:$0xff] %vm33_vm0, %v2038_v3  ;;  %66 = vst.msk [vmem:[#allocation3] sm:$0xff] %vm33_vm0, %v2038_v3  ;;  %1996 = vmatpush3.bf16.msra.mxu0 %v1993_v14  ;;  %2036 = vmatpush3.bf16.msra.mxu1 %v1993_v14  ;;  %v956_v44 = vld [vmem:[%s3263_s3 + $0x38] sm:$0xff]  ;;  %v2435_v45 = vld [vmem:[%s3261_s0 + $0x28] sm:$0xff]  ;;  %v2009_v49 = vpack.c.bf16 %v627_v42, %v626_v41 }
  0x12   :  { %67 = vst.msk [vmem:[#allocation3 + $0x8] sm:$0xff] %vm33_vm0, %v2038_v3  ;;  %68 = vst.msk [vmem:[#allocation3 + $0x10] sm:$0xff] %vm33_vm0, %v2038_v3  ;;  %1998 = vmatprep.subr.bf16.mxu1 %v1997_v19  ;;  %2014 = vmatprep.subr.bf16.mxu0 %v2013_v20  ;;  %v2440_v46 = vld [vmem:[%s3261_s0 + $0xa8] sm:$0xff]  ;;  %v2445_v47 = vld [vmem:[%s3261_s0 + $0x30] sm:$0xff]  ;;  %v2025_v50 = vpack.c.bf16 %v956_v44, %v955_v43 }
  0x13   :  { %69 = vst.msk [vmem:[#allocation3 + $0x18] sm:$0xff] %vm33_vm0, %v2038_v3  ;;  %70 = vst.msk [vmem:[#allocation3 + $0x20] sm:$0xff] %vm33_vm0, %v2038_v3  ;;  %v2450_v48 = vld [vmem:[%s3261_s0 + $0xb0] sm:$0xff]  ;;  %v137_v51 = vld [vmem:[%s3261_s0 + $0x38] sm:$0xff] }
  0x14   :  { %71 = vst.msk [vmem:[#allocation3 + $0x28] sm:$0xff] %vm33_vm0, %v2038_v3  ;;  %72 = vst.msk [vmem:[#allocation3 + $0x30] sm:$0xff] %vm33_vm0, %v2038_v3  ;;  %1806 = vmatmul.mubr.msk.f32.vlgmr.msra.gmra.mrb[0].mxu0 %vm33_vm0, %v2355_v25  ;;  %1830 = vmatmul.mubr.msk.f32.vlgmr.msra.gmra.mrb[0].mxu1 %vm33_vm0, %v2360_v26  ;;  %v2466_v52 = vld [vmem:[%s3261_s0 + $0xb8] sm:$0xff]  ;;  %v138_v53 = vld [vmem:[%s3261_s0 + $0x40] sm:$0xff] }
  0x15   :  { %73 = vst.msk [vmem:[#allocation3 + $0x38] sm:$0xff] %vm33_vm0, %v2038_v3  ;;  %74 = vst.msk [vmem:[#allocation3 + $0x40] sm:$0xff] %vm33_vm0, %v2038_v3  ;;  %2000 = vmatpush3.bf16.msra.mxu1 %v1997_v19  ;;  %2016 = vmatpush3.bf16.msra.mxu0 %v2013_v20  ;;  %v2474_v54 = vld [vmem:[%s3261_s0 + $0xc0] sm:$0xff]  ;;  %v139_v55 = vld [vmem:[%s3261_s0 + $0x48] sm:$0xff] }
  0x16   :  { %75 = vst.msk [vmem:[#allocation3 + $0x48] sm:$0xff] %vm33_vm0, %v2038_v3  ;;  %76 = vst.msk [vmem:[#allocation3 + $0x50] sm:$0xff] %vm33_vm0, %v2038_v3  ;;  %1808 = vmatprep.mubr.msk.f32.mxu0 %vm33_vm0, %v2365_v27  ;;  %1832 = vmatprep.mubr.msk.f32.mxu1 %vm33_vm0, %v2370_v28  ;;  %v2488_v56 = vld [vmem:[%s3261_s0 + $0xc8] sm:$0xff]  ;;  %v140_v57 = vld [vmem:[%s3261_s0 + $0x50] sm:$0xff] }
  0x17   :  { %77 = vst.msk [vmem:[#allocation3 + $0x58] sm:$0xff] %vm33_vm0, %v2038_v3  ;;  %78 = vst.msk [vmem:[#allocation3 + $0x60] sm:$0xff] %vm33_vm0, %v2038_v3  ;;  %2002 = vmatprep.subr.bf16.mxu1 %v2001_v29  ;;  %2018 = vmatprep.subr.bf16.mxu0 %v2017_v30  ;;  %v2496_v58 = vld [vmem:[%s3261_s0 + $0xd0] sm:$0xff]  ;;  %v141_v59 = vld [vmem:[%s3261_s0 + $0x58] sm:$0xff] }
  0x18   :  { %79 = vst.msk [vmem:[#allocation3 + $0x68] sm:$0xff] %vm33_vm0, %v2038_v3  ;;  %80 = vst.msk [vmem:[#allocation3 + $0x70] sm:$0xff] %vm33_vm0, %v2038_v3  ;;  %1809 = vmatmul.mubr.msk.f32.gmra.mrb[2].mxu0 %vm33_vm0, %v2391_v35  ;;  %1833 = vmatmul.mubr.msk.f32.gmra.mrb[2].mxu1 %vm33_vm0, %v2396_v36  ;;  %v2510_v60 = vld [vmem:[%s3261_s0 + $0xd8] sm:$0xff]  ;;  %v142_v61 = vld [vmem:[%s3261_s0 + $0x60] sm:$0xff] }
  0x19   :  { %81 = vst.msk [vmem:[#allocation3 + $0x78] sm:$0xff] %vm33_vm0, %v2038_v3  ;;  %82 = vst.msk [vmem:[#allocation3 + $0x80] sm:$0xff] %vm33_vm0, %v2038_v3  ;;  %1811 = vmatprep.mubr.msk.f32.mxu0 %vm33_vm0, %v2405_v37  ;;  %1835 = vmatprep.mubr.msk.f32.mxu1 %vm33_vm0, %v2410_v38  ;;  %v2518_v62 = vld [vmem:[%s3261_s0 + $0xe0] sm:$0xff]  ;;  %v143_v63 = vld [vmem:[%s3261_s0 + $0x68] sm:$0xff] }
  0x1a   :  { %83 = vst.msk [vmem:[#allocation3 + $0x88] sm:$0xff] %vm33_vm0, %v2038_v3  ;;  %84 = vst.msk [vmem:[#allocation3 + $0x90] sm:$0xff] %vm33_vm0, %v2038_v3  ;;  %2004 = vmatpush3.bf16.msra.mxu1 %v2001_v29  ;;  %2020 = vmatpush3.bf16.msra.mxu0 %v2017_v30  ;;  %v2532_v0 = vld [vmem:[%s3261_s0 + $0xe8] sm:$0xff]  ;;  %v144_v1 = vld [vmem:[%s3261_s0 + $0x70] sm:$0xff] }
  0x1b   :  { %85 = vst.msk [vmem:[#allocation3 + $0x98] sm:$0xff] %vm33_vm0, %v2038_v3  ;;  %86 = vst.msk [vmem:[#allocation3 + $0xa0] sm:$0xff] %vm33_vm0, %v2038_v3  ;;  %2006 = vmatprep.subr.bf16.mxu1 %v2005_v39  ;;  %2022 = vmatprep.subr.bf16.mxu0 %v2021_v40  ;;  %v2540_v2 = vld [vmem:[%s3261_s0 + $0xf0] sm:$0xff]  ;;  %v2554_v4 = vld [vmem:[%s3261_s0 + $0xf8] sm:$0xff] }
  0x1c   :  { %87 = vst.msk [vmem:[#allocation3 + $0xa8] sm:$0xff] %vm33_vm0, %v2038_v3  ;;  %88 = vst.msk [vmem:[#allocation3 + $0xb0] sm:$0xff] %vm33_vm0, %v2038_v3  ;;  %1812 = vmatmul.mubr.msk.f32.gmra.mrb[4].mxu0 %vm33_vm0, %v2435_v45  ;;  %1836 = vmatmul.mubr.msk.f32.gmra.mrb[4].mxu1 %vm33_vm0, %v2440_v46  ;;  %v163_v5 = vld [vmem:[#allocation2 + $0x8] sm:$0xff]  ;;  %v162_v7 = vld [vmem:[#allocation2] sm:$0xff] }
  0x1d   :  { %89 = vst.msk [vmem:[#allocation3 + $0xb8] sm:$0xff] %vm33_vm0, %v2038_v3  ;;  %90 = vst.msk [vmem:[#allocation3 + $0xc0] sm:$0xff] %vm33_vm0, %v2038_v3  ;;  %1814 = vmatprep.mubr.msk.f32.mxu0 %vm33_vm0, %v2445_v47  ;;  %1838 = vmatprep.mubr.msk.f32.mxu1 %vm33_vm0, %v2450_v48  ;;  %v179_v6 = vld [vmem:[#allocation2 + $0x88] sm:$0xff]  ;;  %v178_v8 = vld [vmem:[#allocation2 + $0x80] sm:$0xff] }
  0x1e   :  { %91 = vst.msk [vmem:[#allocation3 + $0xc8] sm:$0xff] %vm33_vm0, %v2038_v3  ;;  %92 = vst.msk [vmem:[#allocation3 + $0xd0] sm:$0xff] %vm33_vm0, %v2038_v3  ;;  %2008 = vmatpush3.bf16.msra.mxu1 %v2005_v39  ;;  %2024 = vmatpush3.bf16.msra.mxu0 %v2021_v40  ;;  %v165_v17 = vld [vmem:[#allocation2 + $0x18] sm:$0xff]  ;;  %v164_v19 = vld [vmem:[#allocation2 + $0x10] sm:$0xff] }
  0x1f   :  { %93 = vst.msk [vmem:[#allocation3 + $0xd8] sm:$0xff] %vm33_vm0, %v2038_v3  ;;  %94 = vst.msk [vmem:[#allocation3 + $0xe0] sm:$0xff] %vm33_vm0, %v2038_v3  ;;  %2010 = vmatprep.subr.bf16.mxu1 %v2009_v49  ;;  %2026 = vmatprep.subr.bf16.mxu0 %v2025_v50  ;;  %v181_v18 = vld [vmem:[#allocation2 + $0x98] sm:$0xff]  ;;  %v180_v20 = vld [vmem:[#allocation2 + $0x90] sm:$0xff] }
  0x20   :  { %95 = vst.msk [vmem:[#allocation3 + $0xe8] sm:$0xff] %vm33_vm0, %v2038_v3  ;;  %96 = vst.msk [vmem:[#allocation3 + $0xf0] sm:$0xff] %vm33_vm0, %v2038_v3  ;;  %1815 = vmatmul.mubr.msk.f32.gmra.mrb[6].mxu0 %vm33_vm0, %v137_v51  ;;  %1839 = vmatmul.mubr.msk.f32.gmra.mrb[6].mxu1 %vm33_vm0, %v2466_v52  ;;  %v167_v29 = vld [vmem:[#allocation2 + $0x28] sm:$0xff]  ;;  %v166_v31 = vld [vmem:[#allocation2 + $0x20] sm:$0xff] }
  0x21   :  { %97 = vst.msk [vmem:[#allocation3 + $0xf8] sm:$0xff] %vm33_vm0, %v2038_v3  ;;  %98 = vst.msk [vmem:[#allocation4] sm:$0xff] %vm33_vm0, %v2038_v3  ;;  %1817 = vmatprep.mubr.msk.f32.mxu0 %vm33_vm0, %v138_v53  ;;  %1841 = vmatprep.mubr.msk.f32.mxu1 %vm33_vm0, %v2474_v54  ;;  %v183_v30 = vld [vmem:[#allocation2 + $0xa8] sm:$0xff]  ;;  %v182_v32 = vld [vmem:[#allocation2 + $0xa0] sm:$0xff] }
  0x22   :  { %99 = vst.msk [vmem:[#allocation4 + $0x8] sm:$0xff] %vm33_vm0, %v2038_v3  ;;  %100 = vst.msk [vmem:[#allocation4 + $0x10] sm:$0xff] %vm33_vm0, %v2038_v3  ;;  %2012 = vmatpush3.bf16.msra.mxu1 %v2009_v49  ;;  %2028 = vmatpush3.bf16.msra.mxu0 %v2025_v50  ;;  %v2678_v33 = vld [vmem:[%s3264_s4] ss:$0 sm:$0xff]  ;;  %v169_v40 = vld [vmem:[#allocation2 + $0x38] sm:$0xff] }
  0x23   :  { %101 = vst.msk [vmem:[#allocation4 + $0x18] sm:$0xff] %vm33_vm0, %v2038_v3  ;;  %102 = vst.msk [vmem:[#allocation4 + $0x20] sm:$0xff] %vm33_vm0, %v2038_v3  ;;  %v185_v41 = vld [vmem:[#allocation2 + $0xb8] sm:$0xff] }
  0x24   :  { %103 = vst.msk [vmem:[#allocation4 + $0x28] sm:$0xff] %vm33_vm0, %v2038_v3  ;;  %104 = vst.msk [vmem:[#allocation4 + $0x30] sm:$0xff] %vm33_vm0, %v2038_v3  ;;  %1818 = vmatmul.mubr.msk.f32.gmra.mrb[8].mxu0 %vm33_vm0, %v139_v55  ;;  %1842 = vmatmul.mubr.msk.f32.gmra.mrb[8].mxu1 %vm33_vm0, %v2488_v56 }
  0x25   :  { %105 = vst.msk [vmem:[#allocation4 + $0x38] sm:$0xff] %vm33_vm0, %v2038_v3  ;;  %106 = vst.msk [vmem:[#allocation4 + $0x40] sm:$0xff] %vm33_vm0, %v2038_v3  ;;  %1820 = vmatprep.mubr.msk.f32.mxu0 %vm33_vm0, %v140_v57  ;;  %1844 = vmatprep.mubr.msk.f32.mxu1 %vm33_vm0, %v2496_v58 }
  0x26   :  { %107 = vst.msk [vmem:[#allocation4 + $0x48] sm:$0xff] %vm33_vm0, %v2038_v3  ;;  %108 = vst.msk [vmem:[#allocation4 + $0x50] sm:$0xff] %vm33_vm0, %v2038_v3 }
  0x27   :  { %109 = vst.msk [vmem:[#allocation4 + $0x58] sm:$0xff] %vm33_vm0, %v2038_v3  ;;  %110 = vst.msk [vmem:[#allocation4 + $0x60] sm:$0xff] %vm33_vm0, %v2038_v3 }
  0x28   :  { %111 = vst.msk [vmem:[#allocation4 + $0x68] sm:$0xff] %vm33_vm0, %v2038_v3  ;;  %112 = vst.msk [vmem:[#allocation4 + $0x70] sm:$0xff] %vm33_vm0, %v2038_v3  ;;  %1821 = vmatmul.mubr.msk.f32.gmra.mrb[10].mxu0 %vm33_vm0, %v141_v59  ;;  %1845 = vmatmul.mubr.msk.f32.gmra.mrb[10].mxu1 %vm33_vm0, %v2510_v60 }
  0x29   :  { %113 = vst.msk [vmem:[#allocation4 + $0x78] sm:$0xff] %vm33_vm0, %v2038_v3  ;;  %114 = vst.msk [vmem:[#allocation4 + $0x80] sm:$0xff] %vm33_vm0, %v2038_v3  ;;  %1823 = vmatprep.mubr.msk.f32.mxu0 %vm33_vm0, %v142_v61  ;;  %1847 = vmatprep.mubr.msk.f32.mxu1 %vm33_vm0, %v2518_v62 }
  0x2a   :  { %115 = vst.msk [vmem:[#allocation4 + $0x88] sm:$0xff] %vm33_vm0, %v2038_v3  ;;  %116 = vst.msk [vmem:[#allocation4 + $0x90] sm:$0xff] %vm33_vm0, %v2038_v3 }
  0x2b   :  { %117 = vst.msk [vmem:[#allocation4 + $0x98] sm:$0xff] %vm33_vm0, %v2038_v3  ;;  %118 = vst.msk [vmem:[#allocation4 + $0xa0] sm:$0xff] %vm33_vm0, %v2038_v3 }
  0x2c   :  { %119 = vst.msk [vmem:[#allocation4 + $0xa8] sm:$0xff] %vm33_vm0, %v2038_v3  ;;  %120 = vst.msk [vmem:[#allocation4 + $0xb0] sm:$0xff] %vm33_vm0, %v2038_v3  ;;  %1824 = vmatmul.mubr.msk.f32.gmra.mrb[12].mxu0 %vm33_vm0, %v143_v63  ;;  %1848 = vmatmul.mubr.msk.f32.gmra.mrb[12].mxu1 %vm33_vm0, %v2532_v0 }
  0x2d   :  { %121 = vst.msk [vmem:[#allocation4 + $0xb8] sm:$0xff] %vm33_vm0, %v2038_v3  ;;  %122 = vst.msk [vmem:[#allocation4 + $0xc0] sm:$0xff] %vm33_vm0, %v2038_v3  ;;  %1826 = vmatprep.mubr.msk.f32.mxu0 %vm33_vm0, %v144_v1  ;;  %1850 = vmatprep.mubr.msk.f32.mxu1 %vm33_vm0, %v2540_v2 }
  0x2e   :  { %123 = vst.msk [vmem:[#allocation4 + $0xc8] sm:$0xff] %vm33_vm0, %v2038_v3  ;;  %124 = vst.msk [vmem:[#allocation4 + $0xd0] sm:$0xff] %vm33_vm0, %v2038_v3 }
  0x2f   :  { %125 = vst.msk [vmem:[#allocation4 + $0xd8] sm:$0xff] %vm33_vm0, %v2038_v3  ;;  %126 = vst.msk [vmem:[#allocation4 + $0xe0] sm:$0xff] %vm33_vm0, %v2038_v3 }
  0x30   :  { %127 = vst.msk [vmem:[#allocation4 + $0xe8] sm:$0xff] %vm33_vm0, %v2038_v3  ;;  %128 = vst.msk [vmem:[#allocation4 + $0xf0] sm:$0xff] %vm33_vm0, %v2038_v3  ;;  %1851 = vmatmul.mubr.msk.f32.gmra.mrb[14].mxu1 %vm33_vm0, %v2554_v4 }
  0x31   :  { %129 = vst.msk [vmem:[#allocation4 + $0xf8] sm:$0xff] %vm33_vm0, %v2038_v3  ;;  %v145_v3 = vld [vmem:[%s3261_s0 + $0x78] sm:$0xff]  ;;  %1869 = vmatprep.mubr.msk.f32.mxu1 %vm33_vm0, %v2311_v9 }
  0x32   :  { %1827 = vmatmul.mubr.msk.f32.gmra.mrb[14].mxu0 %vm33_vm0, %v145_v3 }
  0x33   :  { %1933 = vmatprep.mubr.msk.f32.mxu0 %vm33_vm0, %v2311_v9 }
  0x34   :  { %1870 = vmatmul.mubr.msk.f32.vlgmr.msra.gmra.mrb[16].mxu1 %vm33_vm0, %v2355_v25 }
  0x35   :  { %1872 = vmatprep.mubr.msk.f32.mxu1 %vm33_vm0, %v2365_v27 }
  0x36   :  { %1934 = vmatmul.mubr.msk.f32.vlgmr.msra.gmra.mrb[16].mxu0 %vm33_vm0, %v2355_v25 }
  0x37   :  { %1936 = vmatprep.mubr.msk.f32.mxu0 %vm33_vm0, %v2365_v27 }
  0x38   :  { %1873 = vmatmul.mubr.msk.f32.gmra.mrb[18].mxu1 %vm33_vm0, %v2391_v35 }
  0x39   :  { %1875 = vmatprep.mubr.msk.f32.mxu1 %vm33_vm0, %v2405_v37 }
  0x3a   :  { %1937 = vmatmul.mubr.msk.f32.gmra.mrb[18].mxu0 %vm33_vm0, %v2391_v35 }
  0x3b   :  { %1939 = vmatprep.mubr.msk.f32.mxu0 %vm33_vm0, %v2405_v37 }
  0x3c   :  { %1876 = vmatmul.mubr.msk.f32.gmra.mrb[20].mxu1 %vm33_vm0, %v2435_v45 }
  0x3d   :  { %1878 = vmatprep.mubr.msk.f32.mxu1 %vm33_vm0, %v2445_v47 }
  0x3e   :  { %1940 = vmatmul.mubr.msk.f32.gmra.mrb[20].mxu0 %vm33_vm0, %v2435_v45 }
  0x3f   :  { %1942 = vmatprep.mubr.msk.f32.mxu0 %vm33_vm0, %v2445_v47 }
  0x40   :  { %1879 = vmatmul.mubr.msk.f32.gmra.mrb[22].mxu1 %vm33_vm0, %v137_v51 }
  0x41   :  { %1881 = vmatprep.mubr.msk.f32.mxu1 %vm33_vm0, %v138_v53 }
  0x42   :  { %1943 = vmatmul.mubr.msk.f32.gmra.mrb[22].mxu0 %vm33_vm0, %v137_v51  ;;  %v184_v51 = vld [vmem:[#allocation2 + $0xb0] sm:$0xff] }
  0x43   :  { %1945 = vmatprep.mubr.msk.f32.mxu0 %vm33_vm0, %v138_v53 }
  0x44   :  { %1882 = vmatmul.mubr.msk.f32.gmra.mrb[24].mxu1 %vm33_vm0, %v139_v55 }
  0x45   :  { %1884 = vmatprep.mubr.msk.f32.mxu1 %vm33_vm0, %v140_v57 }
  0x46   :  { %1946 = vmatmul.mubr.msk.f32.gmra.mrb[24].mxu0 %vm33_vm0, %v139_v55 }
  0x47   :  { %1948 = vmatprep.mubr.msk.f32.mxu0 %vm33_vm0, %v140_v57 }
  0x48   :  { %1885 = vmatmul.mubr.msk.f32.gmra.mrb[26].mxu1 %vm33_vm0, %v141_v59 }
  0x49   :  { %1887 = vmatprep.mubr.msk.f32.mxu1 %vm33_vm0, %v142_v61 }
  0x4a   :  { %1949 = vmatmul.mubr.msk.f32.gmra.mrb[26].mxu0 %vm33_vm0, %v141_v59 }
  0x4b   :  { %1951 = vmatprep.mubr.msk.f32.mxu0 %vm33_vm0, %v142_v61  ;;  %v187_v61 = vld [vmem:[#allocation2 + $0xc8] sm:$0xff] }
  0x4c   :  { %1888 = vmatmul.mubr.msk.f32.gmra.mrb[28].mxu1 %vm33_vm0, %v143_v63 }
  0x4d   :  { %1890 = vmatprep.mubr.msk.f32.mxu1 %vm33_vm0, %v144_v1 }
  0x4e   :  { %1952 = vmatmul.mubr.msk.f32.gmra.mrb[28].mxu0 %vm33_vm0, %v143_v63 }
  0x4f   :  { %1954 = vmatprep.mubr.msk.f32.mxu0 %vm33_vm0, %v144_v1 }
  0x50   :  { %1891 = vmatmul.mubr.msk.f32.gmra.mrb[30].mxu1 %vm33_vm0, %v145_v3 }
  0x51   :  { %1893 = vmatprep.mubr.msk.f32.mxu1 %vm33_vm0, %v2316_v10 }
  0x52   :  { %1955 = vmatmul.mubr.msk.f32.gmra.mrb[30].mxu0 %vm33_vm0, %v145_v3 }
  0x53   :  { %1957 = vmatprep.mubr.msk.f32.mxu0 %vm33_vm0, %v2316_v10 }
  0x54   :  { %1894 = vmatmul.mubr.msk.f32.gmra.mrb[32].mxu1 %vm33_vm0, %v2360_v26 }
  0x55   :  { %1896 = vmatprep.mubr.msk.f32.mxu1 %vm33_vm0, %v2370_v28 }
  0x56   :  { %1958 = vmatmul.mubr.msk.f32.gmra.mrb[32].mxu0 %vm33_vm0, %v2360_v26 }
  0x57   :  { %1960 = vmatprep.mubr.msk.f32.mxu0 %vm33_vm0, %v2370_v28 }
  0x58   :  { %1897 = vmatmul.mubr.msk.f32.gmra.mrb[34].mxu1 %vm33_vm0, %v2396_v36 }
  0x59   :  { %1899 = vmatprep.mubr.msk.f32.mxu1 %vm33_vm0, %v2410_v38 }
  0x5a   :  { %1961 = vmatmul.mubr.msk.f32.gmra.mrb[34].mxu0 %vm33_vm0, %v2396_v36 }
  0x5b   :  { %1963 = vmatprep.mubr.msk.f32.mxu0 %vm33_vm0, %v2410_v38 }
  0x5c   :  { %1900 = vmatmul.mubr.msk.f32.gmra.mrb[36].mxu1 %vm33_vm0, %v2440_v46 }
  0x5d   :  { %1902 = vmatprep.mubr.msk.f32.mxu1 %vm33_vm0, %v2450_v48 }
  0x5e   :  { %1964 = vmatmul.mubr.msk.f32.gmra.mrb[36].mxu0 %vm33_vm0, %v2440_v46  ;;  %v168_v46 = vld [vmem:[#allocation2 + $0x30] sm:$0xff] }
  0x5f   :  { %1966 = vmatprep.mubr.msk.f32.mxu0 %vm33_vm0, %v2450_v48 }
  0x60   :  { %1903 = vmatmul.mubr.msk.f32.gmra.mrb[38].mxu1 %vm33_vm0, %v2466_v52 }
  0x61   :  { %1905 = vmatprep.mubr.msk.f32.mxu1 %vm33_vm0, %v2474_v54 }
  0x62   :  { %1967 = vmatmul.mubr.msk.f32.gmra.mrb[38].mxu0 %vm33_vm0, %v2466_v52 }
  0x63   :  { %1969 = vmatprep.mubr.msk.f32.mxu0 %vm33_vm0, %v2474_v54 }
  0x64   :  { %1906 = vmatmul.mubr.msk.f32.gmra.mrb[40].mxu1 %vm33_vm0, %v2488_v56 }
  0x65   :  { %1908 = vmatprep.mubr.msk.f32.mxu1 %vm33_vm0, %v2496_v58 }
  0x66   :  { %1970 = vmatmul.mubr.msk.f32.gmra.mrb[40].mxu0 %vm33_vm0, %v2488_v56 }
  0x67   :  { %1972 = vmatprep.mubr.msk.f32.mxu0 %vm33_vm0, %v2496_v58 }
  0x68   :  { %1909 = vmatmul.mubr.msk.f32.gmra.mrb[42].mxu1 %vm33_vm0, %v2510_v60 }
  0x69   :  { %1911 = vmatprep.mubr.msk.f32.mxu1 %vm33_vm0, %v2518_v62 }
  0x6a   :  { %1973 = vmatmul.mubr.msk.f32.gmra.mrb[42].mxu0 %vm33_vm0, %v2510_v60  ;;  %v171_v60 = vld [vmem:[#allocation2 + $0x48] sm:$0xff] }
  0x6b   :  { %1975 = vmatprep.mubr.msk.f32.mxu0 %vm33_vm0, %v2518_v62 }
  0x6c   :  { %1912 = vmatmul.mubr.msk.f32.gmra.mrb[44].mxu1 %vm33_vm0, %v2532_v0 }
  0x6d   :  { %1914 = vmatprep.mubr.msk.f32.mxu1 %vm33_vm0, %v2540_v2 }
  0x6e   :  { %1976 = vmatmul.mubr.msk.f32.gmra.mrb[44].mxu0 %vm33_vm0, %v2532_v0 }
  0x6f   :  { %1978 = vmatprep.mubr.msk.f32.mxu0 %vm33_vm0, %v2540_v2  ;;  %v170_v2 = vld [vmem:[#allocation2 + $0x40] sm:$0xff] }
  0x70   :  { %1915 = vmatmul.mubr.msk.f32.gmra.mrb[46].mxu1 %vm33_vm0, %v2554_v4 }
  0x72   :  { %1979 = vmatmul.mubr.msk.f32.gmra.mrb[46].mxu0 %vm33_vm0, %v2554_v4 }
  0xe7   :  { %v1807_v9 = vpop.f32.mrb[0].mxu0  ;;  %v1831_v10 = vpop.f32.mrb[0].mxu1 }
  0xe8   :  { %v525_v11 = vadd.f32 %v1807_v9, %v163_v5  ;;  %v541_v12 = vadd.f32 %v1831_v10, %v179_v6  ;;  %v365_v13 = vpop.f32.mrb[1].mxu0  ;;  %v445_v14 = vpop.f32.mrb[1].mxu1 }
  0xe9   :  { %v524_v15 = vadd.f32 %v365_v13, %v162_v7  ;;  %v540_v16 = vadd.f32 %v445_v14, %v178_v8  ;;  %v186_v7 = vld [vmem:[#allocation2 + $0xc0] sm:$0xff] }
  0xea   :  { %557 = vst.msk [vmem:[#allocation2 + $0x8] sm:$0xff] %vm33_vm0, %v525_v11  ;;  %573 = vst.msk [vmem:[#allocation2 + $0x88] sm:$0xff] %vm33_vm0, %v541_v12 }
  0xeb   :  { %556 = vst.msk [vmem:[#allocation2] sm:$0xff] %vm33_vm0, %v524_v15  ;;  %572 = vst.msk [vmem:[#allocation2 + $0x80] sm:$0xff] %vm33_vm0, %v540_v16  ;;  %v1810_v21 = vpop.f32.mrb[2].mxu0  ;;  %v1834_v22 = vpop.f32.mrb[2].mxu1  ;;  %v173_v16 = vld [vmem:[#allocation2 + $0x58] sm:$0xff] }
  0xec   :  { %v527_v23 = vadd.f32 %v1810_v21, %v165_v17  ;;  %v543_v24 = vadd.f32 %v1834_v22, %v181_v18  ;;  %v375_v25 = vpop.f32.mrb[3].mxu0  ;;  %v455_v26 = vpop.f32.mrb[3].mxu1  ;;  %v189_v17 = vld [vmem:[#allocation2 + $0xd8] sm:$0xff]  ;;  %v172_v22 = vld [vmem:[#allocation2 + $0x50] sm:$0xff] }
  0xed   :  { %v526_v27 = vadd.f32 %v375_v25, %v164_v19  ;;  %v542_v28 = vadd.f32 %v455_v26, %v180_v20 }
  0xee   :  { %559 = vst.msk [vmem:[#allocation2 + $0x18] sm:$0xff] %vm33_vm0, %v527_v23  ;;  %575 = vst.msk [vmem:[#allocation2 + $0x98] sm:$0xff] %vm33_vm0, %v543_v24 }
  0xef   :  { %558 = vst.msk [vmem:[#allocation2 + $0x10] sm:$0xff] %vm33_vm0, %v526_v27  ;;  %574 = vst.msk [vmem:[#allocation2 + $0x90] sm:$0xff] %vm33_vm0, %v542_v28  ;;  %v1813_v34 = vpop.f32.mrb[4].mxu0  ;;  %v1837_v35 = vpop.f32.mrb[4].mxu1  ;;  %v188_v27 = vld [vmem:[#allocation2 + $0xd0] sm:$0xff] }
  0xf0   :  { %v529_v36 = vadd.f32 %v1813_v34, %v167_v29  ;;  %v545_v37 = vadd.f32 %v1837_v35, %v183_v30  ;;  %v385_v38 = vpop.f32.mrb[5].mxu0  ;;  %v465_v39 = vpop.f32.mrb[5].mxu1 }
  0xf1   :  { %v1250_v42 = vld [vmem:[#allocation2 + $0x8] sm:$0xff]  ;;  %v528_v44 = vadd.f32 %v385_v38, %v166_v31  ;;  %v544_v45 = vadd.f32 %v465_v39, %v182_v32 }
  0xf2   :  { %v1266_v43 = vld [vmem:[#allocation2 + $0x88] sm:$0xff]  ;;  %v1289_v47 = vadd.f32 %v2678_v33, %v1250_v42  ;;  %v1249_v49 = vld [vmem:[#allocation2] sm:$0xff]  ;;  %561 = vst.msk [vmem:[#allocation2 + $0x28] sm:$0xff] %vm33_vm0, %v529_v36  ;;  %577 = vst.msk [vmem:[#allocation2 + $0xa8] sm:$0xff] %vm33_vm0, %v545_v37 }
  0xf3   :  { %v1305_v48 = vadd.f32 %v2678_v33, %v1266_v43  ;;  %v1265_v50 = vld [vmem:[#allocation2 + $0x80] sm:$0xff]  ;;  %v1288_v52 = vadd.f32 %v2678_v33, %v1249_v49  ;;  %560 = vst.msk [vmem:[#allocation2 + $0x20] sm:$0xff] %vm33_vm0, %v528_v44  ;;  %576 = vst.msk [vmem:[#allocation2 + $0xa0] sm:$0xff] %vm33_vm0, %v544_v45  ;;  %v1816_v54 = vpop.f32.mrb[6].mxu0  ;;  %v1840_v55 = vpop.f32.mrb[6].mxu1  ;;  %v175_v37 = vld [vmem:[#allocation2 + $0x68] sm:$0xff] }
  0xf4   :  { %v1304_v53 = vadd.f32 %v2678_v33, %v1265_v50  ;;  %1321 = vst.msk [vmem:[%s3265_s7 + $0x8] sm:$0xff] %vm33_vm0, %v1289_v47  ;;  %v531_v56 = vadd.f32 %v1816_v54, %v169_v40  ;;  %v547_v57 = vadd.f32 %v1840_v55, %v185_v41  ;;  %v395_v58 = vpop.f32.mrb[7].mxu0  ;;  %v475_v59 = vpop.f32.mrb[7].mxu1  ;;  %v191_v38 = vld [vmem:[#allocation2 + $0xe8] sm:$0xff]  ;;  %v174_v43 = vld [vmem:[#allocation2 + $0x60] sm:$0xff] }
  0xf5   :  { %1337 = vst.msk [vmem:[%s3265_s7 + $0x88] sm:$0xff] %vm33_vm0, %v1305_v48  ;;  %1320 = vst.msk [vmem:[%s3265_s7] sm:$0xff] %vm33_vm0, %v1288_v52  ;;  %v1252_v62 = vld [vmem:[#allocation2 + $0x18] sm:$0xff]  ;;  %v530_v0 = vadd.f32 %v395_v58, %v168_v46  ;;  %v546_v1 = vadd.f32 %v475_v59, %v184_v51  ;;  %v190_v48 = vld [vmem:[#allocation2 + $0xe0] sm:$0xff] }
  0xf6   :  { %1336 = vst.msk [vmem:[%s3265_s7 + $0x80] sm:$0xff] %vm33_vm0, %v1304_v53  ;;  %v1268_v63 = vld [vmem:[#allocation2 + $0x98] sm:$0xff]  ;;  %v1291_v3 = vadd.f32 %v2678_v33, %v1252_v62  ;;  %v1251_v5 = vld [vmem:[#allocation2 + $0x10] sm:$0xff]  ;;  %563 = vst.msk [vmem:[#allocation2 + $0x38] sm:$0xff] %vm33_vm0, %v531_v56 }
  0xf7   :  { %v1307_v4 = vadd.f32 %v2678_v33, %v1268_v63  ;;  %v1267_v6 = vld [vmem:[#allocation2 + $0x90] sm:$0xff]  ;;  %579 = vst.msk [vmem:[#allocation2 + $0xb8] sm:$0xff] %vm33_vm0, %v547_v57  ;;  %v1290_v8 = vadd.f32 %v2678_v33, %v1251_v5  ;;  %562 = vst.msk [vmem:[#allocation2 + $0x30] sm:$0xff] %vm33_vm0, %v530_v0  ;;  %v1819_v10 = vpop.f32.mrb[8].mxu0  ;;  %v1843_v11 = vpop.f32.mrb[8].mxu1  ;;  %v177_v57 = vld [vmem:[#allocation2 + $0x78] sm:$0xff] }
  0xf8   :  { %v1306_v9 = vadd.f32 %v2678_v33, %v1267_v6  ;;  %578 = vst.msk [vmem:[#allocation2 + $0xb0] sm:$0xff] %vm33_vm0, %v546_v1  ;;  %1323 = vst.msk [vmem:[%s3265_s7 + $0x18] sm:$0xff] %vm33_vm0, %v1291_v3  ;;  %v533_v12 = vadd.f32 %v1819_v10, %v171_v60  ;;  %v549_v13 = vadd.f32 %v1843_v11, %v187_v61  ;;  %v405_v14 = vpop.f32.mrb[9].mxu0  ;;  %v485_v15 = vpop.f32.mrb[9].mxu1  ;;  %v193_v58 = vld [vmem:[#allocation2 + $0xf8] sm:$0xff]  ;;  %v176_v63 = vld [vmem:[#allocation2 + $0x70] sm:$0xff] }
  0xf9   :  { %1339 = vst.msk [vmem:[%s3265_s7 + $0x98] sm:$0xff] %vm33_vm0, %v1307_v4  ;;  %1322 = vst.msk [vmem:[%s3265_s7 + $0x10] sm:$0xff] %vm33_vm0, %v1290_v8  ;;  %v1254_v18 = vld [vmem:[#allocation2 + $0x28] sm:$0xff]  ;;  %v532_v20 = vadd.f32 %v405_v14, %v170_v2  ;;  %v548_v21 = vadd.f32 %v485_v15, %v186_v7  ;;  %v192_v4 = vld [vmem:[#allocation2 + $0xf0] sm:$0xff] }
  0xfa   :  { %1338 = vst.msk [vmem:[%s3265_s7 + $0x90] sm:$0xff] %vm33_vm0, %v1306_v9  ;;  %v1270_v19 = vld [vmem:[#allocation2 + $0xa8] sm:$0xff]  ;;  %v1293_v23 = vadd.f32 %v2678_v33, %v1254_v18  ;;  %v1253_v25 = vld [vmem:[#allocation2 + $0x20] sm:$0xff]  ;;  %565 = vst.msk [vmem:[#allocation2 + $0x48] sm:$0xff] %vm33_vm0, %v533_v12 }
  0xfb   :  { %v1309_v24 = vadd.f32 %v2678_v33, %v1270_v19  ;;  %v1269_v26 = vld [vmem:[#allocation2 + $0xa0] sm:$0xff]  ;;  %581 = vst.msk [vmem:[#allocation2 + $0xc8] sm:$0xff] %vm33_vm0, %v549_v13  ;;  %v1292_v28 = vadd.f32 %v2678_v33, %v1253_v25  ;;  %564 = vst.msk [vmem:[#allocation2 + $0x40] sm:$0xff] %vm33_vm0, %v532_v20  ;;  %v1822_v30 = vpop.f32.mrb[10].mxu0  ;;  %v1846_v31 = vpop.f32.mrb[10].mxu1  ;;  %v589_v13 = vld [vmem:[#allocation3 + $0x8] sm:$0xff] }
  0xfc   :  { %v1308_v29 = vadd.f32 %v2678_v33, %v1269_v26  ;;  %580 = vst.msk [vmem:[#allocation2 + $0xc0] sm:$0xff] %vm33_vm0, %v548_v21  ;;  %1325 = vst.msk [vmem:[%s3265_s7 + $0x28] sm:$0xff] %vm33_vm0, %v1293_v23  ;;  %v535_v32 = vadd.f32 %v1822_v30, %v173_v16  ;;  %v551_v34 = vadd.f32 %v1846_v31, %v189_v17  ;;  %v415_v35 = vpop.f32.mrb[11].mxu0  ;;  %v495_v36 = vpop.f32.mrb[11].mxu1  ;;  %v918_v14 = vld [vmem:[#allocation4 + $0x8] sm:$0xff]  ;;  %v588_v19 = vld [vmem:[#allocation3] sm:$0xff] }
  0xfd   :  { %1341 = vst.msk [vmem:[%s3265_s7 + $0xa8] sm:$0xff] %vm33_vm0, %v1309_v24  ;;  %1324 = vst.msk [vmem:[%s3265_s7 + $0x20] sm:$0xff] %vm33_vm0, %v1292_v28  ;;  %v1256_v39 = vld [vmem:[#allocation2 + $0x38] sm:$0xff]  ;;  %v534_v41 = vadd.f32 %v415_v35, %v172_v22  ;;  %v550_v42 = vadd.f32 %v495_v36, %v188_v27  ;;  %v917_v24 = vld [vmem:[#allocation4] sm:$0xff] }
  0xfe   :  { %1340 = vst.msk [vmem:[%s3265_s7 + $0xa0] sm:$0xff] %vm33_vm0, %v1308_v29  ;;  %v1272_v40 = vld [vmem:[#allocation2 + $0xb8] sm:$0xff]  ;;  %v1295_v44 = vadd.f32 %v2678_v33, %v1256_v39  ;;  %v1255_v46 = vld [vmem:[#allocation2 + $0x30] sm:$0xff]  ;;  %567 = vst.msk [vmem:[#allocation2 + $0x58] sm:$0xff] %vm33_vm0, %v535_v32 }
  0xff   :  { %v1311_v45 = vadd.f32 %v2678_v33, %v1272_v40  ;;  %v1271_v47 = vld [vmem:[#allocation2 + $0xb0] sm:$0xff]  ;;  %583 = vst.msk [vmem:[#allocation2 + $0xd8] sm:$0xff] %vm33_vm0, %v551_v34  ;;  %v1294_v49 = vadd.f32 %v2678_v33, %v1255_v46  ;;  %566 = vst.msk [vmem:[#allocation2 + $0x50] sm:$0xff] %vm33_vm0, %v534_v41  ;;  %v1825_v51 = vpop.f32.mrb[12].mxu0  ;;  %v1849_v52 = vpop.f32.mrb[12].mxu1  ;;  %v591_v34 = vld [vmem:[#allocation3 + $0x18] sm:$0xff] }
 0x100   :  { %v1310_v50 = vadd.f32 %v2678_v33, %v1271_v47  ;;  %582 = vst.msk [vmem:[#allocation2 + $0xd0] sm:$0xff] %vm33_vm0, %v550_v42  ;;  %1327 = vst.msk [vmem:[%s3265_s7 + $0x38] sm:$0xff] %vm33_vm0, %v1295_v44  ;;  %v537_v53 = vadd.f32 %v1825_v51, %v175_v37  ;;  %v553_v54 = vadd.f32 %v1849_v52, %v191_v38  ;;  %v425_v55 = vpop.f32.mrb[13].mxu0  ;;  %v505_v56 = vpop.f32.mrb[13].mxu1  ;;  %v920_v35 = vld [vmem:[#allocation4 + $0x18] sm:$0xff]  ;;  %v590_v40 = vld [vmem:[#allocation3 + $0x10] sm:$0xff] }
 0x101   :  { %1343 = vst.msk [vmem:[%s3265_s7 + $0xb8] sm:$0xff] %vm33_vm0, %v1311_v45  ;;  %1326 = vst.msk [vmem:[%s3265_s7 + $0x30] sm:$0xff] %vm33_vm0, %v1294_v49  ;;  %v1258_v59 = vld [vmem:[#allocation2 + $0x48] sm:$0xff]  ;;  %v536_v61 = vadd.f32 %v425_v55, %v174_v43  ;;  %v552_v62 = vadd.f32 %v505_v56, %v190_v48  ;;  %v919_v45 = vld [vmem:[#allocation4 + $0x10] sm:$0xff] }
 0x102   :  { %1342 = vst.msk [vmem:[%s3265_s7 + $0xb0] sm:$0xff] %vm33_vm0, %v1310_v50  ;;  %v1274_v60 = vld [vmem:[#allocation2 + $0xc8] sm:$0xff]  ;;  %v1297_v0 = vadd.f32 %v2678_v33, %v1258_v59  ;;  %v1257_v2 = vld [vmem:[#allocation2 + $0x40] sm:$0xff]  ;;  %569 = vst.msk [vmem:[#allocation2 + $0x68] sm:$0xff] %vm33_vm0, %v537_v53 }
 0x103   :  { %v1313_v1 = vadd.f32 %v2678_v33, %v1274_v60  ;;  %v1273_v3 = vld [vmem:[#allocation2 + $0xc0] sm:$0xff]  ;;  %585 = vst.msk [vmem:[#allocation2 + $0xe8] sm:$0xff] %vm33_vm0, %v553_v54  ;;  %v1296_v5 = vadd.f32 %v2678_v33, %v1257_v2  ;;  %568 = vst.msk [vmem:[#allocation2 + $0x60] sm:$0xff] %vm33_vm0, %v536_v61  ;;  %v1852_v8 = vpop.f32.mrb[14].mxu1  ;;  %v593_v54 = vld [vmem:[#allocation3 + $0x28] sm:$0xff] }
 0x104   :  { %v1312_v6 = vadd.f32 %v2678_v33, %v1273_v3  ;;  %584 = vst.msk [vmem:[#allocation2 + $0xe0] sm:$0xff] %vm33_vm0, %v552_v62  ;;  %1329 = vst.msk [vmem:[%s3265_s7 + $0x48] sm:$0xff] %vm33_vm0, %v1297_v0  ;;  %v555_v10 = vadd.f32 %v1852_v8, %v193_v58  ;;  %v515_v12 = vpop.f32.mrb[15].mxu1  ;;  %v922_v55 = vld [vmem:[#allocation4 + $0x28] sm:$0xff]  ;;  %v592_v60 = vld [vmem:[#allocation3 + $0x20] sm:$0xff] }
 0x105   :  { %v1828_v7 = vpop.f32.mrb[14].mxu0  ;;  %1345 = vst.msk [vmem:[%s3265_s7 + $0xc8] sm:$0xff] %vm33_vm0, %v1313_v1  ;;  %1328 = vst.msk [vmem:[%s3265_s7 + $0x40] sm:$0xff] %vm33_vm0, %v1296_v5  ;;  %v1260_v15 = vld [vmem:[#allocation2 + $0x58] sm:$0xff]  ;;  %v554_v18 = vadd.f32 %v515_v12, %v192_v4  ;;  %v921_v1 = vld [vmem:[#allocation4 + $0x20] sm:$0xff] }
 0x106   :  { %v539_v9 = vadd.f32 %v1828_v7, %v177_v57  ;;  %v435_v11 = vpop.f32.mrb[15].mxu0  ;;  %1344 = vst.msk [vmem:[%s3265_s7 + $0xc0] sm:$0xff] %vm33_vm0, %v1312_v6  ;;  %v1276_v16 = vld [vmem:[#allocation2 + $0xd8] sm:$0xff]  ;;  %v1299_v20 = vadd.f32 %v2678_v33, %v1260_v15  ;;  %v1259_v22 = vld [vmem:[#allocation2 + $0x50] sm:$0xff]  ;;  %587 = vst.msk [vmem:[#allocation2 + $0xf8] sm:$0xff] %vm33_vm0, %v555_v10 }
 0x107   :  { %v538_v17 = vadd.f32 %v435_v11, %v176_v63  ;;  %v1315_v21 = vadd.f32 %v2678_v33, %v1276_v16  ;;  %v1275_v23 = vld [vmem:[#allocation2 + $0xd0] sm:$0xff]  ;;  %v1298_v25 = vadd.f32 %v2678_v33, %v1259_v22  ;;  %586 = vst.msk [vmem:[#allocation2 + $0xf0] sm:$0xff] %vm33_vm0, %v554_v18  ;;  %v1871_v27 = vpop.f32.mrb[16].mxu1  ;;  %v2859_v4 = vld [vmem:[%s3266_s5] ss:$0 sm:$0xff]  ;;  %v595_v11 = vld [vmem:[#allocation3 + $0x38] sm:$0xff] }
 0x108   :  { %571 = vst.msk [vmem:[#allocation2 + $0x78] sm:$0xff] %vm33_vm0, %v539_v9  ;;  %v1314_v26 = vadd.f32 %v2678_v33, %v1275_v23  ;;  %1331 = vst.msk [vmem:[%s3265_s7 + $0x58] sm:$0xff] %vm33_vm0, %v1299_v20  ;;  %v854_v29 = vadd.f32 %v1871_v27, %v589_v13  ;;  %v694_v31 = vpop.f32.mrb[17].mxu1  ;;  %v2864_v5 = vld [vmem:[%s3267_s6] ss:$0 sm:$0xff]  ;;  %v924_v12 = vld [vmem:[#allocation4 + $0x38] sm:$0xff] }
 0x109   :  { %570 = vst.msk [vmem:[#allocation2 + $0x70] sm:$0xff] %vm33_vm0, %v538_v17  ;;  %v1935_v28 = vpop.f32.mrb[16].mxu0  ;;  %1347 = vst.msk [vmem:[%s3265_s7 + $0xd8] sm:$0xff] %vm33_vm0, %v1315_v21  ;;  %v1262_v36 = vld [vmem:[#allocation2 + $0x68] sm:$0xff]  ;;  %v853_v38 = vadd.f32 %v694_v31, %v588_v19  ;;  %v594_v17 = vld [vmem:[#allocation3 + $0x30] sm:$0xff] }
 0x10a   :  { %v1183_v30 = vadd.f32 %v1935_v28, %v918_v14  ;;  %v1023_v32 = vpop.f32.mrb[17].mxu0  ;;  %1330 = vst.msk [vmem:[%s3265_s7 + $0x50] sm:$0xff] %vm33_vm0, %v1298_v25  ;;  %1346 = vst.msk [vmem:[%s3265_s7 + $0xd0] sm:$0xff] %vm33_vm0, %v1314_v26  ;;  %v1278_v37 = vld [vmem:[#allocation2 + $0xe8] sm:$0xff]  ;;  %v1301_v41 = vadd.f32 %v2678_v33, %v1262_v36  ;;  %v1261_v43 = vld [vmem:[#allocation2 + $0x60] sm:$0xff] }
 0x10b   :  { %v1182_v39 = vadd.f32 %v1023_v32, %v917_v24  ;;  %v1317_v42 = vadd.f32 %v2678_v33, %v1278_v37  ;;  %v1277_v44 = vld [vmem:[#allocation2 + $0xe0] sm:$0xff]  ;;  %886 = vst.msk [vmem:[#allocation3 + $0x8] sm:$0xff] %vm33_vm0, %v854_v29  ;;  %v1300_v46 = vadd.f32 %v2678_v33, %v1261_v43  ;;  %885 = vst.msk [vmem:[#allocation3] sm:$0xff] %vm33_vm0, %v853_v38  ;;  %v1874_v48 = vpop.f32.mrb[18].mxu1  ;;  %v923_v22 = vld [vmem:[#allocation4 + $0x30] sm:$0xff] }
 0x10c   :  { %1215 = vst.msk [vmem:[#allocation4 + $0x8] sm:$0xff] %vm33_vm0, %v1183_v30  ;;  %v1316_v47 = vadd.f32 %v2678_v33, %v1277_v44  ;;  %1333 = vst.msk [vmem:[%s3265_s7 + $0x68] sm:$0xff] %vm33_vm0, %v1301_v41  ;;  %v856_v50 = vadd.f32 %v1874_v48, %v591_v34  ;;  %v704_v52 = vpop.f32.mrb[19].mxu1  ;;  %v597_v31 = vld [vmem:[#allocation3 + $0x48] sm:$0xff]  ;;  %v596_v38 = vld [vmem:[#allocation3 + $0x40] sm:$0xff] }
 0x10d   :  { %1214 = vst.msk [vmem:[#allocation4] sm:$0xff] %vm33_vm0, %v1182_v39  ;;  %v1938_v49 = vpop.f32.mrb[18].mxu0  ;;  %1349 = vst.msk [vmem:[%s3265_s7 + $0xe8] sm:$0xff] %vm33_vm0, %v1317_v42  ;;  %v1280_v57 = vld [vmem:[#allocation2 + $0xf8] sm:$0xff]  ;;  %v855_v58 = vadd.f32 %v704_v52, %v590_v40  ;;  %v926_v32 = vld [vmem:[#allocation4 + $0x48] sm:$0xff] }
 0x10e   :  { %v1185_v51 = vadd.f32 %v1938_v49, %v920_v35  ;;  %v1033_v53 = vpop.f32.mrb[19].mxu0  ;;  %1332 = vst.msk [vmem:[%s3265_s7 + $0x60] sm:$0xff] %vm33_vm0, %v1300_v46  ;;  %1348 = vst.msk [vmem:[%s3265_s7 + $0xe0] sm:$0xff] %vm33_vm0, %v1316_v47  ;;  %v1319_v62 = vadd.f32 %v2678_v33, %v1280_v57  ;;  %v1279_v0 = vld [vmem:[#allocation2 + $0xf0] sm:$0xff]  ;;  %v925_v43 = vld [vmem:[#allocation4 + $0x40] sm:$0xff] }
 0x10f   :  { %v1264_v56 = vld [vmem:[#allocation2 + $0x78] sm:$0xff]  ;;  %v1184_v59 = vadd.f32 %v1033_v53, %v919_v45  ;;  %888 = vst.msk [vmem:[#allocation3 + $0x18] sm:$0xff] %vm33_vm0, %v856_v50  ;;  %v1318_v3 = vadd.f32 %v2678_v33, %v1279_v0  ;;  %887 = vst.msk [vmem:[#allocation3 + $0x10] sm:$0xff] %vm33_vm0, %v855_v58  ;;  %v1877_v6 = vpop.f32.mrb[20].mxu1  ;;  %v598_v58 = vld [vmem:[#allocation3 + $0x50] sm:$0xff] }
 0x110   :  { %v1303_v61 = vadd.f32 %v2678_v33, %v1264_v56  ;;  %v1263_v63 = vld [vmem:[#allocation2 + $0x70] sm:$0xff]  ;;  %1217 = vst.msk [vmem:[#allocation4 + $0x18] sm:$0xff] %vm33_vm0, %v1185_v51  ;;  %1351 = vst.msk [vmem:[%s3265_s7 + $0xf8] sm:$0xff] %vm33_vm0, %v1319_v62  ;;  %v714_v9 = vpop.f32.mrb[21].mxu1  ;;  %v599_v52 = vld [vmem:[#allocation3 + $0x58] sm:$0xff] }
 0x111   :  { %v1302_v2 = vadd.f32 %v2678_v33, %v1263_v63  ;;  %1216 = vst.msk [vmem:[#allocation4 + $0x10] sm:$0xff] %vm33_vm0, %v1184_v59  ;;  %v1941_v7 = vpop.f32.mrb[20].mxu0  ;;  %v858_v33 = vadd.f32 %v1877_v6, %v593_v54  ;;  %1350 = vst.msk [vmem:[%s3265_s7 + $0xf0] sm:$0xff] %vm33_vm0, %v1318_v3  ;;  %v857_v15 = vadd.f32 %v714_v9, %v592_v60  ;;  %v928_v53 = vld [vmem:[#allocation4 + $0x58] sm:$0xff]  ;;  %v927_v63 = vld [vmem:[#allocation4 + $0x50] sm:$0xff] }
 0x112   :  { %1335 = vst.msk [vmem:[%s3265_s7 + $0x78] sm:$0xff] %vm33_vm0, %v1303_v61  ;;  %v1187_v8 = vadd.f32 %v1941_v7, %v922_v55  ;;  %v1043_v10 = vpop.f32.mrb[21].mxu0  ;;  %v1353_v13 = vld [vmem:[#allocation3 + $0x8] sm:$0xff]  ;;  %v1352_v20 = vld [vmem:[#allocation3] sm:$0xff] }
 0x113   :  { %1334 = vst.msk [vmem:[%s3265_s7 + $0x70] sm:$0xff] %vm33_vm0, %v1302_v2  ;;  %v1456_v14 = vld [vmem:[#allocation4 + $0x8] sm:$0xff]  ;;  %v1186_v16 = vadd.f32 %v1043_v10, %v921_v1  ;;  %v1392_v18 = vadd.f32 %v2859_v4, %v1353_v13  ;;  %890 = vst.msk [vmem:[#allocation3 + $0x28] sm:$0xff] %vm33_vm0, %v858_v33  ;;  %v1391_v23 = vadd.f32 %v2859_v4, %v1352_v20  ;;  %v1880_v25 = vpop.f32.mrb[22].mxu1  ;;  %v929_v20 = vld [vmem:[#allocation4 + $0x60] sm:$0xff] }
 0x114   :  { %v1495_v19 = vadd.f32 %v2864_v5, %v1456_v14  ;;  %v1455_v21 = vld [vmem:[#allocation4] sm:$0xff]  ;;  %1219 = vst.msk [vmem:[#allocation4 + $0x28] sm:$0xff] %vm33_vm0, %v1187_v8  ;;  %889 = vst.msk [vmem:[#allocation3 + $0x20] sm:$0xff] %vm33_vm0, %v857_v15  ;;  %v860_v27 = vadd.f32 %v1880_v25, %v595_v11  ;;  %v724_v29 = vpop.f32.mrb[23].mxu1  ;;  %v601_v9 = vld [vmem:[#allocation3 + $0x68] sm:$0xff] }
 0x115   :  { %v1494_v24 = vadd.f32 %v2864_v5, %v1455_v21  ;;  %1218 = vst.msk [vmem:[#allocation4 + $0x20] sm:$0xff] %vm33_vm0, %v1186_v16  ;;  %v1944_v26 = vpop.f32.mrb[22].mxu0  ;;  %1424 = vst.msk [vmem:[%s3268_s8 + $0x8] sm:$0xff] %vm33_vm0, %v1392_v18  ;;  %v859_v36 = vadd.f32 %v724_v29, %v594_v17  ;;  %v930_v10 = vld [vmem:[#allocation4 + $0x68] sm:$0xff]  ;;  %v600_v15 = vld [vmem:[#allocation3 + $0x60] sm:$0xff] }
 0x116   :  { %1527 = vst.msk [vmem:[%s3269_s9 + $0x8] sm:$0xff] %vm33_vm0, %v1495_v19  ;;  %v1189_v28 = vadd.f32 %v1944_v26, %v924_v12  ;;  %v1053_v30 = vpop.f32.mrb[23].mxu0  ;;  %1423 = vst.msk [vmem:[%s3268_s8] sm:$0xff] %vm33_vm0, %v1391_v23  ;;  %v1355_v34 = vld [vmem:[#allocation3 + $0x18] sm:$0xff]  ;;  %v1354_v41 = vld [vmem:[#allocation3 + $0x10] sm:$0xff] }
 0x117   :  { %1526 = vst.msk [vmem:[%s3269_s9] sm:$0xff] %vm33_vm0, %v1494_v24  ;;  %v1458_v35 = vld [vmem:[#allocation4 + $0x18] sm:$0xff]  ;;  %v1188_v37 = vadd.f32 %v1053_v30, %v923_v22  ;;  %v1394_v39 = vadd.f32 %v2859_v4, %v1355_v34  ;;  %892 = vst.msk [vmem:[#allocation3 + $0x38] sm:$0xff] %vm33_vm0, %v860_v27  ;;  %v1393_v44 = vadd.f32 %v2859_v4, %v1354_v41  ;;  %v1883_v46 = vpop.f32.mrb[24].mxu1  ;;  %v931_v41 = vld [vmem:[#allocation4 + $0x70] sm:$0xff] }
 0x118   :  { %v1497_v40 = vadd.f32 %v2864_v5, %v1458_v35  ;;  %v1457_v42 = vld [vmem:[#allocation4 + $0x10] sm:$0xff]  ;;  %1221 = vst.msk [vmem:[#allocation4 + $0x38] sm:$0xff] %vm33_vm0, %v1189_v28  ;;  %891 = vst.msk [vmem:[#allocation3 + $0x30] sm:$0xff] %vm33_vm0, %v859_v36  ;;  %v862_v48 = vadd.f32 %v1883_v46, %v597_v31  ;;  %v734_v50 = vpop.f32.mrb[25].mxu1  ;;  %v603_v29 = vld [vmem:[#allocation3 + $0x78] sm:$0xff] }
 0x119   :  { %v1496_v45 = vadd.f32 %v2864_v5, %v1457_v42  ;;  %1220 = vst.msk [vmem:[#allocation4 + $0x30] sm:$0xff] %vm33_vm0, %v1188_v37  ;;  %v1947_v47 = vpop.f32.mrb[24].mxu0  ;;  %1426 = vst.msk [vmem:[%s3268_s8 + $0x18] sm:$0xff] %vm33_vm0, %v1394_v39  ;;  %v861_v56 = vadd.f32 %v734_v50, %v596_v38  ;;  %v932_v30 = vld [vmem:[#allocation4 + $0x78] sm:$0xff]  ;;  %v602_v36 = vld [vmem:[#allocation3 + $0x70] sm:$0xff] }
 0x11a   :  { %1529 = vst.msk [vmem:[%s3269_s9 + $0x18] sm:$0xff] %vm33_vm0, %v1497_v40  ;;  %v1191_v49 = vadd.f32 %v1947_v47, %v926_v32  ;;  %v1063_v51 = vpop.f32.mrb[25].mxu0  ;;  %1425 = vst.msk [vmem:[%s3268_s8 + $0x10] sm:$0xff] %vm33_vm0, %v1393_v44  ;;  %v1357_v54 = vld [vmem:[#allocation3 + $0x28] sm:$0xff] }
 0x11b   :  { %1528 = vst.msk [vmem:[%s3269_s9 + $0x10] sm:$0xff] %vm33_vm0, %v1496_v45  ;;  %v1460_v55 = vld [vmem:[#allocation4 + $0x28] sm:$0xff]  ;;  %v1190_v57 = vadd.f32 %v1063_v51, %v925_v43  ;;  %v1396_v59 = vadd.f32 %v2859_v4, %v1357_v54  ;;  %v1356_v61 = vld [vmem:[#allocation3 + $0x20] sm:$0xff]  ;;  %894 = vst.msk [vmem:[#allocation3 + $0x48] sm:$0xff] %vm33_vm0, %v862_v48  ;;  %v1886_v2 = vpop.f32.mrb[26].mxu1 }
 0x11c   :  { %v1499_v60 = vadd.f32 %v2864_v5, %v1460_v55  ;;  %v1459_v62 = vld [vmem:[#allocation4 + $0x20] sm:$0xff]  ;;  %1223 = vst.msk [vmem:[#allocation4 + $0x48] sm:$0xff] %vm33_vm0, %v1191_v49  ;;  %v1395_v0 = vadd.f32 %v2859_v4, %v1356_v61  ;;  %893 = vst.msk [vmem:[#allocation3 + $0x40] sm:$0xff] %vm33_vm0, %v861_v56  ;;  %v864_v6 = vadd.f32 %v1886_v2, %v599_v52  ;;  %v744_v33 = vpop.f32.mrb[27].mxu1  ;;  %v605_v50 = vld [vmem:[#allocation3 + $0x88] sm:$0xff] }
 0x11d   :  { %v1498_v1 = vadd.f32 %v2864_v5, %v1459_v62  ;;  %1222 = vst.msk [vmem:[#allocation4 + $0x40] sm:$0xff] %vm33_vm0, %v1190_v57  ;;  %v1950_v3 = vpop.f32.mrb[26].mxu0  ;;  %1428 = vst.msk [vmem:[%s3268_s8 + $0x28] sm:$0xff] %vm33_vm0, %v1396_v59  ;;  %v863_v13 = vadd.f32 %v744_v33, %v598_v58  ;;  %v934_v51 = vld [vmem:[#allocation4 + $0x88] sm:$0xff]  ;;  %v604_v56 = vld [vmem:[#allocation3 + $0x80] sm:$0xff] }
 0x11e   :  { %1531 = vst.msk [vmem:[%s3269_s9 + $0x28] sm:$0xff] %vm33_vm0, %v1499_v60  ;;  %v1193_v7 = vadd.f32 %v1950_v3, %v928_v53  ;;  %v1073_v8 = vpop.f32.mrb[27].mxu0  ;;  %1427 = vst.msk [vmem:[%s3268_s8 + $0x20] sm:$0xff] %vm33_vm0, %v1395_v0  ;;  %v1359_v11 = vld [vmem:[#allocation3 + $0x38] sm:$0xff]  ;;  %v933_v61 = vld [vmem:[#allocation4 + $0x80] sm:$0xff] }
 0x11f   :  { %1530 = vst.msk [vmem:[%s3269_s9 + $0x20] sm:$0xff] %vm33_vm0, %v1498_v1  ;;  %v1462_v12 = vld [vmem:[#allocation4 + $0x38] sm:$0xff]  ;;  %v1192_v14 = vadd.f32 %v1073_v8, %v927_v63  ;;  %v1398_v16 = vadd.f32 %v2859_v4, %v1359_v11  ;;  %v1358_v18 = vld [vmem:[#allocation3 + $0x30] sm:$0xff]  ;;  %896 = vst.msk [vmem:[#allocation3 + $0x58] sm:$0xff] %vm33_vm0, %v864_v6  ;;  %v1889_v23 = vpop.f32.mrb[28].mxu1 }
 0x120   :  { %v1501_v17 = vadd.f32 %v2864_v5, %v1462_v12  ;;  %v1461_v19 = vld [vmem:[#allocation4 + $0x30] sm:$0xff]  ;;  %1225 = vst.msk [vmem:[#allocation4 + $0x58] sm:$0xff] %vm33_vm0, %v1193_v7  ;;  %v1397_v21 = vadd.f32 %v2859_v4, %v1358_v18  ;;  %895 = vst.msk [vmem:[#allocation3 + $0x50] sm:$0xff] %vm33_vm0, %v863_v13  ;;  %v866_v25 = vadd.f32 %v1889_v23, %v601_v9  ;;  %v754_v27 = vpop.f32.mrb[29].mxu1  ;;  %v607_v33 = vld [vmem:[#allocation3 + $0x98] sm:$0xff] }
 0x121   :  { %v1500_v22 = vadd.f32 %v2864_v5, %v1461_v19  ;;  %1224 = vst.msk [vmem:[#allocation4 + $0x50] sm:$0xff] %vm33_vm0, %v1192_v14  ;;  %v1953_v24 = vpop.f32.mrb[28].mxu0  ;;  %1430 = vst.msk [vmem:[%s3268_s8 + $0x38] sm:$0xff] %vm33_vm0, %v1398_v16  ;;  %v865_v34 = vadd.f32 %v754_v27, %v600_v15  ;;  %v936_v8 = vld [vmem:[#allocation4 + $0x98] sm:$0xff]  ;;  %v606_v13 = vld [vmem:[#allocation3 + $0x90] sm:$0xff] }
 0x122   :  { %1533 = vst.msk [vmem:[%s3269_s9 + $0x38] sm:$0xff] %vm33_vm0, %v1501_v17  ;;  %v1195_v26 = vadd.f32 %v1953_v24, %v930_v10  ;;  %v1083_v28 = vpop.f32.mrb[29].mxu0  ;;  %1429 = vst.msk [vmem:[%s3268_s8 + $0x30] sm:$0xff] %vm33_vm0, %v1397_v21  ;;  %v1361_v31 = vld [vmem:[#allocation3 + $0x48] sm:$0xff]  ;;  %v935_v18 = vld [vmem:[#allocation4 + $0x90] sm:$0xff] }
 0x123   :  { %1532 = vst.msk [vmem:[%s3269_s9 + $0x30] sm:$0xff] %vm33_vm0, %v1500_v22  ;;  %v1464_v32 = vld [vmem:[#allocation4 + $0x48] sm:$0xff]  ;;  %v1194_v35 = vadd.f32 %v1083_v28, %v929_v20  ;;  %v1400_v37 = vadd.f32 %v2859_v4, %v1361_v31  ;;  %v1360_v39 = vld [vmem:[#allocation3 + $0x40] sm:$0xff]  ;;  %898 = vst.msk [vmem:[#allocation3 + $0x68] sm:$0xff] %vm33_vm0, %v866_v25  ;;  %v1892_v44 = vpop.f32.mrb[30].mxu1 }
 0x124   :  { %v1503_v38 = vadd.f32 %v2864_v5, %v1464_v32  ;;  %v1463_v40 = vld [vmem:[#allocation4 + $0x40] sm:$0xff]  ;;  %1227 = vst.msk [vmem:[#allocation4 + $0x68] sm:$0xff] %vm33_vm0, %v1195_v26  ;;  %v1399_v42 = vadd.f32 %v2859_v4, %v1360_v39  ;;  %897 = vst.msk [vmem:[#allocation3 + $0x60] sm:$0xff] %vm33_vm0, %v865_v34  ;;  %v868_v46 = vadd.f32 %v1892_v44, %v603_v29  ;;  %v764_v48 = vpop.f32.mrb[31].mxu1  ;;  %v609_v27 = vld [vmem:[#allocation3 + $0xa8] sm:$0xff] }
 0x125   :  { %v1502_v43 = vadd.f32 %v2864_v5, %v1463_v40  ;;  %1226 = vst.msk [vmem:[#allocation4 + $0x60] sm:$0xff] %vm33_vm0, %v1194_v35  ;;  %v1956_v45 = vpop.f32.mrb[30].mxu0  ;;  %1432 = vst.msk [vmem:[%s3268_s8 + $0x48] sm:$0xff] %vm33_vm0, %v1400_v37  ;;  %v867_v54 = vadd.f32 %v764_v48, %v602_v36  ;;  %v938_v28 = vld [vmem:[#allocation4 + $0xa8] sm:$0xff]  ;;  %v608_v34 = vld [vmem:[#allocation3 + $0xa0] sm:$0xff] }
 0x126   :  { %1535 = vst.msk [vmem:[%s3269_s9 + $0x48] sm:$0xff] %vm33_vm0, %v1503_v38  ;;  %v1197_v47 = vadd.f32 %v1956_v45, %v932_v30  ;;  %v1093_v49 = vpop.f32.mrb[31].mxu0  ;;  %1431 = vst.msk [vmem:[%s3268_s8 + $0x40] sm:$0xff] %vm33_vm0, %v1399_v42  ;;  %v1363_v52 = vld [vmem:[#allocation3 + $0x58] sm:$0xff]  ;;  %v937_v39 = vld [vmem:[#allocation4 + $0xa0] sm:$0xff] }
 0x127   :  { %1534 = vst.msk [vmem:[%s3269_s9 + $0x40] sm:$0xff] %vm33_vm0, %v1502_v43  ;;  %v1466_v53 = vld [vmem:[#allocation4 + $0x58] sm:$0xff]  ;;  %v1196_v55 = vadd.f32 %v1093_v49, %v931_v41  ;;  %v1402_v57 = vadd.f32 %v2859_v4, %v1363_v52  ;;  %v1362_v59 = vld [vmem:[#allocation3 + $0x50] sm:$0xff]  ;;  %900 = vst.msk [vmem:[#allocation3 + $0x78] sm:$0xff] %vm33_vm0, %v868_v46  ;;  %v1895_v0 = vpop.f32.mrb[32].mxu1 }
 0x128   :  { %v1505_v58 = vadd.f32 %v2864_v5, %v1466_v53  ;;  %v1465_v60 = vld [vmem:[#allocation4 + $0x50] sm:$0xff]  ;;  %1229 = vst.msk [vmem:[#allocation4 + $0x78] sm:$0xff] %vm33_vm0, %v1197_v47  ;;  %v1401_v62 = vadd.f32 %v2859_v4, %v1362_v59  ;;  %899 = vst.msk [vmem:[#allocation3 + $0x70] sm:$0xff] %vm33_vm0, %v867_v54  ;;  %v870_v2 = vadd.f32 %v1895_v0, %v605_v50  ;;  %v774_v6 = vpop.f32.mrb[33].mxu1  ;;  %v611_v48 = vld [vmem:[#allocation3 + $0xb8] sm:$0xff] }
 0x129   :  { %v1504_v63 = vadd.f32 %v2864_v5, %v1465_v60  ;;  %1228 = vst.msk [vmem:[#allocation4 + $0x70] sm:$0xff] %vm33_vm0, %v1196_v55  ;;  %v1959_v1 = vpop.f32.mrb[32].mxu0  ;;  %1434 = vst.msk [vmem:[%s3268_s8 + $0x58] sm:$0xff] %vm33_vm0, %v1402_v57  ;;  %v869_v11 = vadd.f32 %v774_v6, %v604_v56  ;;  %v940_v49 = vld [vmem:[#allocation4 + $0xb8] sm:$0xff]  ;;  %v610_v54 = vld [vmem:[#allocation3 + $0xb0] sm:$0xff] }
 0x12a   :  { %1537 = vst.msk [vmem:[%s3269_s9 + $0x58] sm:$0xff] %vm33_vm0, %v1505_v58  ;;  %v1199_v3 = vadd.f32 %v1959_v1, %v934_v51  ;;  %v1103_v7 = vpop.f32.mrb[33].mxu0  ;;  %1433 = vst.msk [vmem:[%s3268_s8 + $0x50] sm:$0xff] %vm33_vm0, %v1401_v62  ;;  %v1365_v9 = vld [vmem:[#allocation3 + $0x68] sm:$0xff]  ;;  %v939_v59 = vld [vmem:[#allocation4 + $0xb0] sm:$0xff] }
 0x12b   :  { %1536 = vst.msk [vmem:[%s3269_s9 + $0x50] sm:$0xff] %vm33_vm0, %v1504_v63  ;;  %v1468_v10 = vld [vmem:[#allocation4 + $0x68] sm:$0xff]  ;;  %v1198_v12 = vadd.f32 %v1103_v7, %v933_v61  ;;  %v1404_v14 = vadd.f32 %v2859_v4, %v1365_v9  ;;  %v1364_v16 = vld [vmem:[#allocation3 + $0x60] sm:$0xff]  ;;  %902 = vst.msk [vmem:[#allocation3 + $0x88] sm:$0xff] %vm33_vm0, %v870_v2  ;;  %v1898_v21 = vpop.f32.mrb[34].mxu1 }
 0x12c   :  { %v1507_v15 = vadd.f32 %v2864_v5, %v1468_v10  ;;  %v1467_v17 = vld [vmem:[#allocation4 + $0x60] sm:$0xff]  ;;  %1231 = vst.msk [vmem:[#allocation4 + $0x88] sm:$0xff] %vm33_vm0, %v1199_v3  ;;  %v1403_v19 = vadd.f32 %v2859_v4, %v1364_v16  ;;  %901 = vst.msk [vmem:[#allocation3 + $0x80] sm:$0xff] %vm33_vm0, %v869_v11  ;;  %v872_v23 = vadd.f32 %v1898_v21, %v607_v33  ;;  %v784_v25 = vpop.f32.mrb[35].mxu1  ;;  %v613_v6 = vld [vmem:[#allocation3 + $0xc8] sm:$0xff] }
 0x12d   :  { %v1506_v20 = vadd.f32 %v2864_v5, %v1467_v17  ;;  %1230 = vst.msk [vmem:[#allocation4 + $0x80] sm:$0xff] %vm33_vm0, %v1198_v12  ;;  %v1962_v22 = vpop.f32.mrb[34].mxu0  ;;  %1436 = vst.msk [vmem:[%s3268_s8 + $0x68] sm:$0xff] %vm33_vm0, %v1404_v14  ;;  %v871_v31 = vadd.f32 %v784_v25, %v606_v13  ;;  %v942_v7 = vld [vmem:[#allocation4 + $0xc8] sm:$0xff]  ;;  %v612_v11 = vld [vmem:[#allocation3 + $0xc0] sm:$0xff] }
 0x12e   :  { %1539 = vst.msk [vmem:[%s3269_s9 + $0x68] sm:$0xff] %vm33_vm0, %v1507_v15  ;;  %v1201_v24 = vadd.f32 %v1962_v22, %v936_v8  ;;  %v1113_v26 = vpop.f32.mrb[35].mxu0  ;;  %1435 = vst.msk [vmem:[%s3268_s8 + $0x60] sm:$0xff] %vm33_vm0, %v1403_v19  ;;  %v1367_v29 = vld [vmem:[#allocation3 + $0x78] sm:$0xff]  ;;  %v941_v16 = vld [vmem:[#allocation4 + $0xc0] sm:$0xff] }
 0x12f   :  { %1538 = vst.msk [vmem:[%s3269_s9 + $0x60] sm:$0xff] %vm33_vm0, %v1506_v20  ;;  %v1470_v30 = vld [vmem:[#allocation4 + $0x78] sm:$0xff]  ;;  %v1200_v32 = vadd.f32 %v1113_v26, %v935_v18  ;;  %v1406_v35 = vadd.f32 %v2859_v4, %v1367_v29  ;;  %v1366_v37 = vld [vmem:[#allocation3 + $0x70] sm:$0xff]  ;;  %904 = vst.msk [vmem:[#allocation3 + $0x98] sm:$0xff] %vm33_vm0, %v872_v23  ;;  %v1901_v42 = vpop.f32.mrb[36].mxu1 }
 0x130   :  { %v1509_v36 = vadd.f32 %v2864_v5, %v1470_v30  ;;  %v1469_v38 = vld [vmem:[#allocation4 + $0x70] sm:$0xff]  ;;  %1233 = vst.msk [vmem:[#allocation4 + $0x98] sm:$0xff] %vm33_vm0, %v1201_v24  ;;  %v1405_v40 = vadd.f32 %v2859_v4, %v1366_v37  ;;  %903 = vst.msk [vmem:[#allocation3 + $0x90] sm:$0xff] %vm33_vm0, %v871_v31  ;;  %v874_v44 = vadd.f32 %v1901_v42, %v609_v27  ;;  %v794_v46 = vpop.f32.mrb[37].mxu1  ;;  %v615_v25 = vld [vmem:[#allocation3 + $0xd8] sm:$0xff] }
 0x131   :  { %v1508_v41 = vadd.f32 %v2864_v5, %v1469_v38  ;;  %1232 = vst.msk [vmem:[#allocation4 + $0x90] sm:$0xff] %vm33_vm0, %v1200_v32  ;;  %v1965_v43 = vpop.f32.mrb[36].mxu0  ;;  %1438 = vst.msk [vmem:[%s3268_s8 + $0x78] sm:$0xff] %vm33_vm0, %v1406_v35  ;;  %v873_v52 = vadd.f32 %v794_v46, %v608_v34  ;;  %v944_v26 = vld [vmem:[#allocation4 + $0xd8] sm:$0xff]  ;;  %v614_v31 = vld [vmem:[#allocation3 + $0xd0] sm:$0xff] }
 0x132   :  { %1541 = vst.msk [vmem:[%s3269_s9 + $0x78] sm:$0xff] %vm33_vm0, %v1509_v36  ;;  %v1203_v45 = vadd.f32 %v1965_v43, %v938_v28  ;;  %v1123_v47 = vpop.f32.mrb[37].mxu0  ;;  %1437 = vst.msk [vmem:[%s3268_s8 + $0x70] sm:$0xff] %vm33_vm0, %v1405_v40  ;;  %v1369_v50 = vld [vmem:[#allocation3 + $0x88] sm:$0xff]  ;;  %v943_v37 = vld [vmem:[#allocation4 + $0xd0] sm:$0xff] }
 0x133   :  { %1540 = vst.msk [vmem:[%s3269_s9 + $0x70] sm:$0xff] %vm33_vm0, %v1508_v41  ;;  %v1472_v51 = vld [vmem:[#allocation4 + $0x88] sm:$0xff]  ;;  %v1202_v53 = vadd.f32 %v1123_v47, %v937_v39  ;;  %v1408_v55 = vadd.f32 %v2859_v4, %v1369_v50  ;;  %v1368_v57 = vld [vmem:[#allocation3 + $0x80] sm:$0xff]  ;;  %906 = vst.msk [vmem:[#allocation3 + $0xa8] sm:$0xff] %vm33_vm0, %v874_v44  ;;  %v1904_v62 = vpop.f32.mrb[38].mxu1 }
 0x134   :  { %v1511_v56 = vadd.f32 %v2864_v5, %v1472_v51  ;;  %v1471_v58 = vld [vmem:[#allocation4 + $0x80] sm:$0xff]  ;;  %1235 = vst.msk [vmem:[#allocation4 + $0xa8] sm:$0xff] %vm33_vm0, %v1203_v45  ;;  %v1407_v60 = vadd.f32 %v2859_v4, %v1368_v57  ;;  %905 = vst.msk [vmem:[#allocation3 + $0xa0] sm:$0xff] %vm33_vm0, %v873_v52  ;;  %v876_v0 = vadd.f32 %v1904_v62, %v611_v48  ;;  %v804_v2 = vpop.f32.mrb[39].mxu1  ;;  %v617_v46 = vld [vmem:[#allocation3 + $0xe8] sm:$0xff] }
 0x135   :  { %v1510_v61 = vadd.f32 %v2864_v5, %v1471_v58  ;;  %1234 = vst.msk [vmem:[#allocation4 + $0xa0] sm:$0xff] %vm33_vm0, %v1202_v53  ;;  %v1968_v63 = vpop.f32.mrb[38].mxu0  ;;  %1440 = vst.msk [vmem:[%s3268_s8 + $0x88] sm:$0xff] %vm33_vm0, %v1408_v55  ;;  %v875_v9 = vadd.f32 %v804_v2, %v610_v54  ;;  %v946_v47 = vld [vmem:[#allocation4 + $0xe8] sm:$0xff]  ;;  %v616_v52 = vld [vmem:[#allocation3 + $0xe0] sm:$0xff] }
 0x136   :  { %1543 = vst.msk [vmem:[%s3269_s9 + $0x88] sm:$0xff] %vm33_vm0, %v1511_v56  ;;  %v1205_v1 = vadd.f32 %v1968_v63, %v940_v49  ;;  %v1133_v3 = vpop.f32.mrb[39].mxu0  ;;  %1439 = vst.msk [vmem:[%s3268_s8 + $0x80] sm:$0xff] %vm33_vm0, %v1407_v60  ;;  %v1371_v33 = vld [vmem:[#allocation3 + $0x98] sm:$0xff]  ;;  %v945_v57 = vld [vmem:[#allocation4 + $0xe0] sm:$0xff] }
 0x137   :  { %1542 = vst.msk [vmem:[%s3269_s9 + $0x80] sm:$0xff] %vm33_vm0, %v1510_v61  ;;  %v1474_v8 = vld [vmem:[#allocation4 + $0x98] sm:$0xff]  ;;  %v1204_v10 = vadd.f32 %v1133_v3, %v939_v59  ;;  %v1410_v12 = vadd.f32 %v2859_v4, %v1371_v33  ;;  %v1370_v14 = vld [vmem:[#allocation3 + $0x90] sm:$0xff]  ;;  %908 = vst.msk [vmem:[#allocation3 + $0xb8] sm:$0xff] %vm33_vm0, %v876_v0  ;;  %v1907_v19 = vpop.f32.mrb[40].mxu1 }
 0x138   :  { %v1513_v13 = vadd.f32 %v2864_v5, %v1474_v8  ;;  %v1473_v15 = vld [vmem:[#allocation4 + $0x90] sm:$0xff]  ;;  %1237 = vst.msk [vmem:[#allocation4 + $0xb8] sm:$0xff] %vm33_vm0, %v1205_v1  ;;  %v1409_v17 = vadd.f32 %v2859_v4, %v1370_v14  ;;  %907 = vst.msk [vmem:[#allocation3 + $0xb0] sm:$0xff] %vm33_vm0, %v875_v9  ;;  %v878_v21 = vadd.f32 %v1907_v19, %v613_v6  ;;  %v814_v23 = vpop.f32.mrb[41].mxu1  ;;  %v619_v2 = vld [vmem:[#allocation3 + $0xf8] sm:$0xff] }
 0x139   :  { %v1512_v18 = vadd.f32 %v2864_v5, %v1473_v15  ;;  %1236 = vst.msk [vmem:[#allocation4 + $0xb0] sm:$0xff] %vm33_vm0, %v1204_v10  ;;  %v1971_v20 = vpop.f32.mrb[40].mxu0  ;;  %1442 = vst.msk [vmem:[%s3268_s8 + $0x98] sm:$0xff] %vm33_vm0, %v1410_v12  ;;  %v877_v29 = vadd.f32 %v814_v23, %v612_v11  ;;  %v948_v3 = vld [vmem:[#allocation4 + $0xf8] sm:$0xff]  ;;  %v618_v9 = vld [vmem:[#allocation3 + $0xf0] sm:$0xff] }
 0x13a   :  { %1545 = vst.msk [vmem:[%s3269_s9 + $0x98] sm:$0xff] %vm33_vm0, %v1513_v13  ;;  %v1207_v22 = vadd.f32 %v1971_v20, %v942_v7  ;;  %v1143_v24 = vpop.f32.mrb[41].mxu0  ;;  %1441 = vst.msk [vmem:[%s3268_s8 + $0x90] sm:$0xff] %vm33_vm0, %v1409_v17  ;;  %v1373_v27 = vld [vmem:[#allocation3 + $0xa8] sm:$0xff]  ;;  %v947_v14 = vld [vmem:[#allocation4 + $0xf0] sm:$0xff] }
 0x13b   :  { %1544 = vst.msk [vmem:[%s3269_s9 + $0x90] sm:$0xff] %vm33_vm0, %v1512_v18  ;;  %v1476_v28 = vld [vmem:[#allocation4 + $0xa8] sm:$0xff]  ;;  %v1206_v30 = vadd.f32 %v1143_v24, %v941_v16  ;;  %v1412_v32 = vadd.f32 %v2859_v4, %v1373_v27  ;;  %v1372_v35 = vld [vmem:[#allocation3 + $0xa0] sm:$0xff]  ;;  %910 = vst.msk [vmem:[#allocation3 + $0xc8] sm:$0xff] %vm33_vm0, %v878_v21  ;;  %v1910_v40 = vpop.f32.mrb[42].mxu1 }
 0x13c   :  { %v1515_v34 = vadd.f32 %v2864_v5, %v1476_v28  ;;  %v1475_v36 = vld [vmem:[#allocation4 + $0xa0] sm:$0xff]  ;;  %1239 = vst.msk [vmem:[#allocation4 + $0xc8] sm:$0xff] %vm33_vm0, %v1207_v22  ;;  %v1411_v38 = vadd.f32 %v2859_v4, %v1372_v35  ;;  %909 = vst.msk [vmem:[#allocation3 + $0xc0] sm:$0xff] %vm33_vm0, %v877_v29  ;;  %v880_v42 = vadd.f32 %v1910_v40, %v615_v25  ;;  %v824_v44 = vpop.f32.mrb[43].mxu1 }
 0x13d   :  { %v1514_v39 = vadd.f32 %v2864_v5, %v1475_v36  ;;  %1238 = vst.msk [vmem:[#allocation4 + $0xc0] sm:$0xff] %vm33_vm0, %v1206_v30  ;;  %v1974_v41 = vpop.f32.mrb[42].mxu0  ;;  %1444 = vst.msk [vmem:[%s3268_s8 + $0xa8] sm:$0xff] %vm33_vm0, %v1412_v32  ;;  %v879_v50 = vadd.f32 %v824_v44, %v614_v31 }
 0x13e   :  { %1547 = vst.msk [vmem:[%s3269_s9 + $0xa8] sm:$0xff] %vm33_vm0, %v1515_v34  ;;  %v1209_v43 = vadd.f32 %v1974_v41, %v944_v26  ;;  %v1153_v45 = vpop.f32.mrb[43].mxu0  ;;  %1443 = vst.msk [vmem:[%s3268_s8 + $0xa0] sm:$0xff] %vm33_vm0, %v1411_v38  ;;  %v1375_v48 = vld [vmem:[#allocation3 + $0xb8] sm:$0xff] }
 0x13f   :  { %1546 = vst.msk [vmem:[%s3269_s9 + $0xa0] sm:$0xff] %vm33_vm0, %v1514_v39  ;;  %v1478_v49 = vld [vmem:[#allocation4 + $0xb8] sm:$0xff]  ;;  %v1208_v51 = vadd.f32 %v1153_v45, %v943_v37  ;;  %v1414_v53 = vadd.f32 %v2859_v4, %v1375_v48  ;;  %v1374_v55 = vld [vmem:[#allocation3 + $0xb0] sm:$0xff]  ;;  %912 = vst.msk [vmem:[#allocation3 + $0xd8] sm:$0xff] %vm33_vm0, %v880_v42  ;;  %v1913_v60 = vpop.f32.mrb[44].mxu1 }
 0x140   :  { %v1517_v54 = vadd.f32 %v2864_v5, %v1478_v49  ;;  %v1477_v56 = vld [vmem:[#allocation4 + $0xb0] sm:$0xff]  ;;  %1241 = vst.msk [vmem:[#allocation4 + $0xd8] sm:$0xff] %vm33_vm0, %v1209_v43  ;;  %v1413_v58 = vadd.f32 %v2859_v4, %v1374_v55  ;;  %911 = vst.msk [vmem:[#allocation3 + $0xd0] sm:$0xff] %vm33_vm0, %v879_v50  ;;  %v882_v62 = vadd.f32 %v1913_v60, %v617_v46  ;;  %v834_v0 = vpop.f32.mrb[45].mxu1 }
 0x141   :  { %v1516_v59 = vadd.f32 %v2864_v5, %v1477_v56  ;;  %1240 = vst.msk [vmem:[#allocation4 + $0xd0] sm:$0xff] %vm33_vm0, %v1208_v51  ;;  %v1977_v61 = vpop.f32.mrb[44].mxu0  ;;  %1446 = vst.msk [vmem:[%s3268_s8 + $0xb8] sm:$0xff] %vm33_vm0, %v1414_v53  ;;  %v881_v33 = vadd.f32 %v834_v0, %v616_v52 }
 0x142   :  { %1549 = vst.msk [vmem:[%s3269_s9 + $0xb8] sm:$0xff] %vm33_vm0, %v1517_v54  ;;  %v1211_v63 = vadd.f32 %v1977_v61, %v946_v47  ;;  %v1163_v1 = vpop.f32.mrb[45].mxu0  ;;  %1445 = vst.msk [vmem:[%s3268_s8 + $0xb0] sm:$0xff] %vm33_vm0, %v1413_v58  ;;  %v1377_v6 = vld [vmem:[#allocation3 + $0xc8] sm:$0xff] }
 0x143   :  { %1548 = vst.msk [vmem:[%s3269_s9 + $0xb0] sm:$0xff] %vm33_vm0, %v1516_v59  ;;  %v1480_v7 = vld [vmem:[#allocation4 + $0xc8] sm:$0xff]  ;;  %v1210_v8 = vadd.f32 %v1163_v1, %v945_v57  ;;  %v1416_v10 = vadd.f32 %v2859_v4, %v1377_v6  ;;  %v1376_v12 = vld [vmem:[#allocation3 + $0xc0] sm:$0xff]  ;;  %914 = vst.msk [vmem:[#allocation3 + $0xe8] sm:$0xff] %vm33_vm0, %v882_v62  ;;  %v1916_v17 = vpop.f32.mrb[46].mxu1 }
 0x144   :  { %v1519_v11 = vadd.f32 %v2864_v5, %v1480_v7  ;;  %v1479_v13 = vld [vmem:[#allocation4 + $0xc0] sm:$0xff]  ;;  %1243 = vst.msk [vmem:[#allocation4 + $0xe8] sm:$0xff] %vm33_vm0, %v1211_v63  ;;  %v1415_v15 = vadd.f32 %v2859_v4, %v1376_v12  ;;  %913 = vst.msk [vmem:[#allocation3 + $0xe0] sm:$0xff] %vm33_vm0, %v881_v33  ;;  %v884_v19 = vadd.f32 %v1916_v17, %v619_v2  ;;  %v844_v21 = vpop.f32.mrb[47].mxu1 }
 0x145   :  { %v1518_v16 = vadd.f32 %v2864_v5, %v1479_v13  ;;  %1242 = vst.msk [vmem:[#allocation4 + $0xe0] sm:$0xff] %vm33_vm0, %v1210_v8  ;;  %v1980_v18 = vpop.f32.mrb[46].mxu0  ;;  %1448 = vst.msk [vmem:[%s3268_s8 + $0xc8] sm:$0xff] %vm33_vm0, %v1416_v10  ;;  %v883_v25 = vadd.f32 %v844_v21, %v618_v9 }
 0x146   :  { %1551 = vst.msk [vmem:[%s3269_s9 + $0xc8] sm:$0xff] %vm33_vm0, %v1519_v11  ;;  %v1213_v20 = vadd.f32 %v1980_v18, %v948_v3  ;;  %v1173_v22 = vpop.f32.mrb[47].mxu0  ;;  %1447 = vst.msk [vmem:[%s3268_s8 + $0xc0] sm:$0xff] %vm33_vm0, %v1415_v15  ;;  %v1379_v23 = vld [vmem:[#allocation3 + $0xd8] sm:$0xff] }
 0x147   :  { %1550 = vst.msk [vmem:[%s3269_s9 + $0xc0] sm:$0xff] %vm33_vm0, %v1518_v16  ;;  %v1482_v24 = vld [vmem:[#allocation4 + $0xd8] sm:$0xff]  ;;  %v1212_v26 = vadd.f32 %v1173_v22, %v947_v14  ;;  %v1418_v27 = vadd.f32 %v2859_v4, %v1379_v23  ;;  %v1378_v29 = vld [vmem:[#allocation3 + $0xd0] sm:$0xff]  ;;  %916 = vst.msk [vmem:[#allocation3 + $0xf8] sm:$0xff] %vm33_vm0, %v884_v19 }
 0x148   :  { %v1521_v28 = vadd.f32 %v2864_v5, %v1482_v24  ;;  %v1481_v30 = vld [vmem:[#allocation4 + $0xd0] sm:$0xff]  ;;  %1245 = vst.msk [vmem:[#allocation4 + $0xf8] sm:$0xff] %vm33_vm0, %v1213_v20  ;;  %v1417_v31 = vadd.f32 %v2859_v4, %v1378_v29  ;;  %915 = vst.msk [vmem:[#allocation3 + $0xf0] sm:$0xff] %vm33_vm0, %v883_v25 }
 0x149   :  { %v1520_v32 = vadd.f32 %v2864_v5, %v1481_v30  ;;  %1244 = vst.msk [vmem:[#allocation4 + $0xf0] sm:$0xff] %vm33_vm0, %v1212_v26  ;;  %1450 = vst.msk [vmem:[%s3268_s8 + $0xd8] sm:$0xff] %vm33_vm0, %v1418_v27 }
 0x14a   :  { %1553 = vst.msk [vmem:[%s3269_s9 + $0xd8] sm:$0xff] %vm33_vm0, %v1521_v28  ;;  %1449 = vst.msk [vmem:[%s3268_s8 + $0xd0] sm:$0xff] %vm33_vm0, %v1417_v31  ;;  %v1381_v34 = vld [vmem:[#allocation3 + $0xe8] sm:$0xff] }
 0x14b   :  { %1552 = vst.msk [vmem:[%s3269_s9 + $0xd0] sm:$0xff] %vm33_vm0, %v1520_v32  ;;  %v1484_v35 = vld [vmem:[#allocation4 + $0xe8] sm:$0xff]  ;;  %v1420_v36 = vadd.f32 %v2859_v4, %v1381_v34  ;;  %v1380_v38 = vld [vmem:[#allocation3 + $0xe0] sm:$0xff] }
 0x14c   :  { %v1523_v37 = vadd.f32 %v2864_v5, %v1484_v35  ;;  %v1483_v39 = vld [vmem:[#allocation4 + $0xe0] sm:$0xff]  ;;  %v1419_v40 = vadd.f32 %v2859_v4, %v1380_v38 }
 0x14d   :  { %v1522_v41 = vadd.f32 %v2864_v5, %v1483_v39  ;;  %1452 = vst.msk [vmem:[%s3268_s8 + $0xe8] sm:$0xff] %vm33_vm0, %v1420_v36 }
 0x14e   :  { %1555 = vst.msk [vmem:[%s3269_s9 + $0xe8] sm:$0xff] %vm33_vm0, %v1523_v37  ;;  %1451 = vst.msk [vmem:[%s3268_s8 + $0xe0] sm:$0xff] %vm33_vm0, %v1419_v40  ;;  %v1383_v42 = vld [vmem:[#allocation3 + $0xf8] sm:$0xff] }
 0x14f   :  { %1554 = vst.msk [vmem:[%s3269_s9 + $0xe0] sm:$0xff] %vm33_vm0, %v1522_v41  ;;  %v1486_v43 = vld [vmem:[#allocation4 + $0xf8] sm:$0xff]  ;;  %v1422_v44 = vadd.f32 %v2859_v4, %v1383_v42  ;;  %v1382_v46 = vld [vmem:[#allocation3 + $0xf0] sm:$0xff] }
 0x150   :  { %v1525_v45 = vadd.f32 %v2864_v5, %v1486_v43  ;;  %v1485_v47 = vld [vmem:[#allocation4 + $0xf0] sm:$0xff]  ;;  %v1421_v48 = vadd.f32 %v2859_v4, %v1382_v46 }
 0x151   :  { %v1524_v49 = vadd.f32 %v2864_v5, %v1485_v47  ;;  %1454 = vst.msk [vmem:[%s3268_s8 + $0xf8] sm:$0xff] %vm33_vm0, %v1422_v44 }
 0x152   :  { %1557 = vst.msk [vmem:[%s3269_s9 + $0xf8] sm:$0xff] %vm33_vm0, %v1525_v45  ;;  %1453 = vst.msk [vmem:[%s3268_s8 + $0xf0] sm:$0xff] %vm33_vm0, %v1421_v48 }
 0x153   :  { %1556 = vst.msk [vmem:[%s3269_s9 + $0xf0] sm:$0xff] %vm33_vm0, %v1524_v49 }

</bundles_post_ra>
